<compile_context>
chip_gen: v7x
topology: tpu7x:2x2x1
jax: 0.10.0
libtpu: 0.0.40
codegen_flags: <defaults>
</compile_context>

<pallas_src>
import functools
import math

import jax
import jax.numpy as jnp
from jax.experimental import pallas as pl
from jax.experimental.pallas import tpu as pltpu

# ---------------- model hyper-parameters (small, consistent with the module) -----
VOCAB_SIZE = 50
EMBED_DIM = 32        # d_model
NUM_HEADS = 4
HEAD_DIM = EMBED_DIM // NUM_HEADS
HIDDEN_DIM = 64       # dim_feedforward
NUM_CLASSES = 5
NUM_LAYERS = 2
BATCH = 2
SEQ = 8
LN_EPS = 1e-5

# ---------------- packed-operand layout (all offsets are static Python ints) -----
PACK_W = 128                                   # lane-dense pack width
EMB_ROWS = 56                                  # VOCAB_SIZE padded to a multiple of 8
FC_R0 = EMB_ROWS                               # fc.weight.T   (E, C) zero-padded to (E, 128)
IND_R0 = FC_R0 + EMBED_DIM                     # head indicator (E, H)
INDT_R0 = IND_R0 + EMBED_DIM                   # head indicator transpose (H, E)
LAYER_R0 = INDT_R0 + 8                         # per-layer weight blocks start here (=128)
WIN_OFF = 0                                    # in_proj.T   (E, 3E)   (Q cols pre-scaled)
WO_OFF = EMBED_DIM                             # out_proj.T  (E, E)
W1_OFF = 2 * EMBED_DIM                         # linear1.T   (E, Hff)
W2_OFF = 3 * EMBED_DIM                         # linear2.T   (Hff, E)
LAYER_STRIDE = 3 * EMBED_DIM + HIDDEN_DIM      # 160 rows per layer
WTS_ROWS = LAYER_R0 + NUM_LAYERS * LAYER_STRIDE          # 448

BIAS_LAYER_R0 = 8                              # row 0 = fc.bias (padded to 128 lanes)
BIAS_LAYER_STRIDE = 8                          # 8 vectors per layer, one row each
BIAS_ROWS = BIAS_LAYER_R0 + NUM_LAYERS * BIAS_LAYER_STRIDE   # 24


# ---------------------------- Pallas kernel --------------------------------------
def _transformer_kernel(ids_ref,     # VMEM (N, 1)  int32 token ids (N = B*S)
                        wts_ref,     # VMEM (448, 128) f32 packed weight matrices
                        bias_ref,    # VMEM (24, 128)  f32 packed bias / LN vectors
                        out_ref,     # VMEM (N, 128)   f32 logits (lanes >= C are zero)
                        *, batch, seq):
    B, S = batch, seq
    E, H, Hff = EMBED_DIM, NUM_HEADS, HIDDEN_DIM
    N = B * S

    # ---- embedding gather as a one-hot MXU matmul (no scalar loop, no scratch) ---
    ids = ids_ref[...]                                              # (N, 1) int32
    iota = jax.lax.broadcasted_iota(jnp.int32, (N, EMB_ROWS), 1)
    onehot = (iota == ids).astype(jnp.float32)                      # (N, V_pad)
    emb = wts_ref[0:EMB_ROWS, 0:E]                                  # (V_pad, E)
    x = jnp.dot(onehot, emb, preferred_element_type=jnp.float32)    # (N, E)

    # head block-indicator matrices (precomputed in the pack): keep heads on the lane
    # axis, so attention never needs per-head slicing or transposes.
    head_ind = wts_ref[IND_R0:IND_R0 + E, 0:H]                      # (E, H)
    head_indT = wts_ref[INDT_R0:INDT_R0 + H, 0:E]                   # (H, E)

    def layer_norm(v, gamma, beta):
        mu = jnp.mean(v, axis=-1, keepdims=True)
        var = jnp.mean((v - mu) ** 2, axis=-1, keepdims=True)
        return (v - mu) * jax.lax.rsqrt(var + LN_EPS) * gamma + beta

    for l in range(NUM_LAYERS):                                     # static, L = 2
        r0 = LAYER_R0 + l * LAYER_STRIDE
        br = BIAS_LAYER_R0 + l * BIAS_LAYER_STRIDE

        win = wts_ref[r0 + WIN_OFF: r0 + WIN_OFF + E, 0:3 * E]      # (E, 3E)
        wo = wts_ref[r0 + WO_OFF: r0 + WO_OFF + E, 0:E]             # (E, E)
        w1 = wts_ref[r0 + W1_OFF: r0 + W1_OFF + E, 0:Hff]           # (E, Hff)
        w2 = wts_ref[r0 + W2_OFF: r0 + W2_OFF + Hff, 0:E]           # (Hff, E)

        binb = bias_ref[br + 0: br + 1, 0:3 * E]
        ob = bias_ref[br + 1: br + 2, 0:E]
        ln1w = bias_ref[br + 2: br + 3, 0:E]
        ln1b = bias_ref[br + 3: br + 4, 0:E]
        b1 = bias_ref[br + 4: br + 5, 0:Hff]
        b2 = bias_ref[br + 5: br + 6, 0:E]
        ln2w = bias_ref[br + 6: br + 7, 0:E]
        ln2b = bias_ref[br + 7: br + 8, 0:E]

        # ---- fused QKV projection: one (N,E)@(E,3E) MXU pass (Q pre-scaled) ------
        qkv = jnp.dot(x, win, preferred_element_type=jnp.float32) + binb
        q = qkv[:, 0:E].reshape(B, S, E)
        k = qkv[:, E:2 * E].reshape(B, S, E)
        v = qkv[:, 2 * E:3 * E].reshape(B, S, E)

        # ---- all-head scores: q⊗k elementwise outer product, reduced per head with
        #      a block-indicator matmul -> (B, Sq, Sk, H); no head transposes.
        prod = q[:, :, None, :] * k[:, None, :, :]                  # (B, S, S, E)
        scores = jnp.dot(prod.reshape(N * S, E), head_ind,
                         preferred_element_type=jnp.float32)
        scores = scores.reshape(B, S, S, H)

        # ---- softmax over the key axis (shift-invariant; magnitudes tiny, so no
        #      max-subtraction); exact reciprocal keeps the 1e-4 tolerance.
        p = jnp.exp(scores)
        p = p * pl.reciprocal(jnp.sum(p, axis=2, keepdims=True))
        # expand per-head probs back to E lanes and apply to V
        pe = jnp.dot(p.reshape(N * S, H), head_indT,
                     preferred_element_type=jnp.float32).reshape(B, S, S, E)
        o = jnp.sum(pe * v[:, None, :, :], axis=2).reshape(N, E)    # (N, E)

        # ---- out_proj + post-norm residual 1 (dropout = identity in eval) --------
        attn = jnp.dot(o, wo, preferred_element_type=jnp.float32) + ob
        x = layer_norm(x + attn, ln1w, ln1b)

        # ---- feed-forward (relu) + post-norm residual 2 ---------------------------
        h1 = jnp.maximum(jnp.dot(x, w1, preferred_element_type=jnp.float32) + b1, 0.0)
        h2 = jnp.dot(h1, w2, preferred_element_type=jnp.float32) + b2
        x = layer_norm(x + h2, ln2w, ln2b)

    # ---- fc on all N rows, lane-dense (N,128) store; wrapper picks seq position 0.
    fcw = wts_ref[FC_R0:FC_R0 + E, :]                                # (E, 128), cols>=C zero
    fcb = bias_ref[0:1, :]                                           # (1, 128), cols>=C zero
    out_ref[...] = jnp.dot(x, fcw, preferred_element_type=jnp.float32) + fcb


@jax.jit
def transformer_classifier_forward(ids, wts, bias):
    """ids: (B,S) int32 token ids; wts/bias: packed operands. Returns (B, C) logits."""
    B, S = ids.shape
    N = B * S
    ids_col = ids.reshape(N, 1).astype(jnp.int32)
    vmem = pl.BlockSpec(memory_space=pltpu.MemorySpace.VMEM)
    out = pl.pallas_call(
        functools.partial(_transformer_kernel, batch=B, seq=S),
        out_shape=jax.ShapeDtypeStruct((N, PACK_W), jnp.float32),
        in_specs=[vmem, vmem, vmem],
        out_specs=vmem,
    )(ids_col, wts, bias)
    # encoded[0]: rows {0, S, 2S, ...}; real logits are the first NUM_CLASSES lanes.
    return out.reshape(B, S, PACK_W)[:, 0, :NUM_CLASSES]


# ---------------- wrapper-side operand packing (runs once, free at inference) ----
def pack_params(params):
    """Pack all weights into 2 lane-dense f32 operands; fold 1/sqrt(Dh) into Q."""
    E, Hff, L, C, V = EMBED_DIM, HIDDEN_DIM, NUM_LAYERS, NUM_CLASSES, VOCAB_SIZE
    scale = 1.0 / math.sqrt(HEAD_DIM)
    winT = params['winT'].at[:, :, :E].multiply(scale)      # scale Q columns
    binb = params['binb'].at[:, :, :E].multiply(scale)      # scale Q bias

    head_ind = (jnp.arange(E)[:, None] // HEAD_DIM ==
                jnp.arange(NUM_HEADS)[None, :]).astype(jnp.float32)   # (E, H)

    wts = jnp.zeros((WTS_ROWS, PACK_W), jnp.float32)
    wts = wts.at[0:V, 0:E].set(params['embedding'])
    wts = wts.at[FC_R0:FC_R0 + E, 0:C].set(params['fcwT'])
    wts = wts.at[IND_R0:IND_R0 + E, 0:NUM_HEADS].set(head_ind)
    wts = wts.at[INDT_R0:INDT_R0 + NUM_HEADS, 0:E].set(head_ind.T)
    for l in range(L):
        r0 = LAYER_R0 + l * LAYER_STRIDE
        wts = wts.at[r0 + WIN_OFF:r0 + WIN_OFF + E, 0:3 * E].set(winT[l])
        wts = wts.at[r0 + WO_OFF:r0 + WO_OFF + E, 0:E].set(params['woT'][l])
        wts = wts.at[r0 + W1_OFF:r0 + W1_OFF + E, 0:Hff].set(params['w1T'][l])
        wts = wts.at[r0 + W2_OFF:r0 + W2_OFF + Hff, 0:E].set(params['w2T'][l])

    bias = jnp.zeros((BIAS_ROWS, PACK_W), jnp.float32)
    bias = bias.at[0, 0:C].set(params['fcb'][0])
    for l in range(L):
        br = BIAS_LAYER_R0 + l * BIAS_LAYER_STRIDE
        bias = bias.at[br + 0, 0:3 * E].set(binb[l, 0])
        bias = bias.at[br + 1, 0:E].set(params['ob'][l, 0])
        bias = bias.at[br + 2, 0:E].set(params['ln1w'][l, 0])
        bias = bias.at[br + 3, 0:E].set(params['ln1b'][l, 0])
        bias = bias.at[br + 4, 0:Hff].set(params['b1'][l, 0])
        bias = bias.at[br + 5, 0:E].set(params['b2'][l, 0])
        bias = bias.at[br + 6, 0:E].set(params['ln2w'][l, 0])
        bias = bias.at[br + 7, 0:E].set(params['ln2b'][l, 0])
    return wts, bias


# ---------------------------- reference (pure JAX, PyTorch semantics) ------------
def reference_forward(ids, params):
    x = jnp.take(params['embedding'], ids, axis=0).astype(jnp.float32)  # (B, S, E)

    def ln(x, g, b):
        mu = jnp.mean(x, -1, keepdims=True)
        var = jnp.mean((x - mu) ** 2, -1, keepdims=True)
        return (x - mu) / jnp.sqrt(var + LN_EPS) * g + b

    B, S, E = x.shape
    H, Dh = NUM_HEADS, E // NUM_HEADS
    for l in range(NUM_LAYERS):
        qkv = x @ params['winT'][l] + params['binb'][l]                  # (B, S, 3E)
        q, k, v = qkv[..., :E], qkv[..., E:2 * E], qkv[..., 2 * E:]
        q = q.reshape(B, S, H, Dh).transpose(0, 2, 1, 3)
        k = k.reshape(B, S, H, Dh).transpose(0, 2, 1, 3)
        v = v.reshape(B, S, H, Dh).transpose(0, 2, 1, 3)
        s = jnp.einsum('bhqd,bhkd->bhqk', q, k) / math.sqrt(Dh)
        p = jax.nn.softmax(s, axis=-1)
        o = jnp.einsum('bhqk,bhkd->bhqd', p, v).transpose(0, 2, 1, 3).reshape(B, S, E)
        o = o @ params['woT'][l] + params['ob'][l]
        x = ln(x + o, params['ln1w'][l], params['ln1b'][l])
        h = jnp.maximum(x @ params['w1T'][l] + params['b1'][l], 0.0)
        h = h @ params['w2T'][l] + params['b2'][l]
        x = ln(x + h, params['ln2w'][l], params['ln2b'][l])
    cls = x[:, 0, :]
    return cls @ params['fcwT'] + params['fcb']


# ---------------------------- deterministic init ---------------------------------
def init_params(key):
    ks = jax.random.split(key, 16)
    E, Hff, L, C, V = EMBED_DIM, HIDDEN_DIM, NUM_LAYERS, NUM_CLASSES, VOCAB_SIZE
    n = lambda k, shape, s=0.05: (s * jax.random.normal(k, shape)).astype(jnp.float32)

    emb = n(ks[0], (V, E), 0.1)
    emb = emb.at[0].set(0.0)                        # padding_idx=0

    params = {
        'embedding': emb,
        # all weights pre-transposed to (in, out) layout
        'winT': n(ks[1], (L, E, 3 * E)),
        'binb': n(ks[2], (L, 1, 3 * E)),
        'woT':  n(ks[3], (L, E, E)),
        'ob':   n(ks[4], (L, 1, E)),
        'ln1w': jnp.ones((L, 1, E), jnp.float32),
        'ln1b': jnp.zeros((L, 1, E), jnp.float32),
        'w1T':  n(ks[5], (L, E, Hff)),
        'b1':   n(ks[6], (L, 1, Hff)),
        'w2T':  n(ks[7], (L, Hff, E)),
        'b2':   n(ks[8], (L, 1, E)),
        'ln2w': jnp.ones((L, 1, E), jnp.float32),
        'ln2b': jnp.zeros((L, 1, E), jnp.float32),
        'fcwT': n(ks[9], (E, C)),
        'fcb':  n(ks[10], (1, C)),
    }
    return params


if __name__ == "__main__":
    key = jax.random.PRNGKey(0)
    k_ids, k_par = jax.random.split(key)
    params = init_params(k_par)                      # canonical (PyTorch-semantics) params
    wts, bias = pack_params(params)                  # 2 packed kernel operands
    ids = jax.random.randint(k_ids, (BATCH, SEQ), 0, VOCAB_SIZE, dtype=jnp.int32)

    logits = transformer_classifier_forward(ids, wts, bias)
    logits = jax.block_until_ready(logits)

    ref = reference_forward(ids, params)
    assert logits.shape == (BATCH, NUM_CLASSES)
    assert jnp.allclose(logits, ref, atol=1e-4, rtol=1e-4), (logits, ref)
    print("KERNEL_OK")
</pallas_src>

<mosaic_0001>
module attributes {stable_mosaic.version = 11 : i64} {
  func.func @_transformer_kernel(%arg0: memref<16x1xi32, #tpu.memory_space<vmem>>, %arg1: memref<448x128xf32, #tpu.memory_space<vmem>>, %arg2: memref<24x128xf32, #tpu.memory_space<vmem>>, %arg3: memref<16x128xf32, #tpu.memory_space<vmem>>) attributes {dimension_semantics = [], scalar_prefetch = 0 : i64, scratch_operands = 0 : i64, tpu.core_type = #tpu.core_type<tc>} {
    %c0 = arith.constant 0 : index
    %c0_0 = arith.constant 0 : index
    %0 = vector.load %arg0[%c0, %c0_0] : memref<16x1xi32, #tpu.memory_space<vmem>>, vector<16x1xi32>
    %1 = tpu.iota {dimensions = array<i32: 1>} : vector<16x56xi32>
    %2 = vector.broadcast %0 : vector<16x1xi32> to vector<16x56xi32>
    %3 = arith.cmpi eq, %1, %2 : vector<16x56xi32>
    %4 = arith.extui %3 : vector<16x56xi1> to vector<16x56xi32>
    %5 = arith.sitofp %4 : vector<16x56xi32> to vector<16x56xf32>
    %c0_1 = arith.constant 0 : index
    %c0_2 = arith.constant 0 : index
    %6 = vector.load %arg1[%c0_1, %c0_2] : memref<448x128xf32, #tpu.memory_space<vmem>>, vector<56x32xf32>
    %cst = arith.constant dense<0.000000e+00> : vector<16x32xf32>
    %7 = tpu.matmul %5, %6, %cst {dimension_numbers = #tpu.dot_dimension_numbers<[1], [0], [0], [1], [0, 0, 1, 1], [], []>} : vector<16x56xf32>, vector<56x32xf32>, vector<16x32xf32> -> vector<16x32xf32>
    %c88 = arith.constant 88 : index
    %c0_3 = arith.constant 0 : index
    %8 = vector.load %arg1[%c88, %c0_3] : memref<448x128xf32, #tpu.memory_space<vmem>>, vector<32x4xf32>
    %c120 = arith.constant 120 : index
    %c0_4 = arith.constant 0 : index
    %9 = vector.load %arg1[%c120, %c0_4] : memref<448x128xf32, #tpu.memory_space<vmem>>, vector<4x32xf32>
    %c128 = arith.constant 128 : index
    %c0_5 = arith.constant 0 : index
    %10 = vector.load %arg1[%c128, %c0_5] : memref<448x128xf32, #tpu.memory_space<vmem>>, vector<32x96xf32>
    %c160 = arith.constant 160 : index
    %c0_6 = arith.constant 0 : index
    %11 = vector.load %arg1[%c160, %c0_6] : memref<448x128xf32, #tpu.memory_space<vmem>>, vector<32x32xf32>
    %c192 = arith.constant 192 : index
    %c0_7 = arith.constant 0 : index
    %12 = vector.load %arg1[%c192, %c0_7] : memref<448x128xf32, #tpu.memory_space<vmem>>, vector<32x64xf32>
    %c224 = arith.constant 224 : index
    %c0_8 = arith.constant 0 : index
    %13 = vector.load %arg1[%c224, %c0_8] : memref<448x128xf32, #tpu.memory_space<vmem>>, vector<64x32xf32>
    %c8 = arith.constant 8 : index
    %c0_9 = arith.constant 0 : index
    %14 = vector.load %arg2[%c8, %c0_9] : memref<24x128xf32, #tpu.memory_space<vmem>>, vector<1x96xf32>
    %c9 = arith.constant 9 : index
    %c0_10 = arith.constant 0 : index
    %15 = vector.load %arg2[%c9, %c0_10] : memref<24x128xf32, #tpu.memory_space<vmem>>, vector<1x32xf32>
    %c10 = arith.constant 10 : index
    %c0_11 = arith.constant 0 : index
    %16 = vector.load %arg2[%c10, %c0_11] : memref<24x128xf32, #tpu.memory_space<vmem>>, vector<1x32xf32>
    %c11 = arith.constant 11 : index
    %c0_12 = arith.constant 0 : index
    %17 = vector.load %arg2[%c11, %c0_12] : memref<24x128xf32, #tpu.memory_space<vmem>>, vector<1x32xf32>
    %c12 = arith.constant 12 : index
    %c0_13 = arith.constant 0 : index
    %18 = vector.load %arg2[%c12, %c0_13] : memref<24x128xf32, #tpu.memory_space<vmem>>, vector<1x64xf32>
    %c13 = arith.constant 13 : index
    %c0_14 = arith.constant 0 : index
    %19 = vector.load %arg2[%c13, %c0_14] : memref<24x128xf32, #tpu.memory_space<vmem>>, vector<1x32xf32>
    %c14 = arith.constant 14 : index
    %c0_15 = arith.constant 0 : index
    %20 = vector.load %arg2[%c14, %c0_15] : memref<24x128xf32, #tpu.memory_space<vmem>>, vector<1x32xf32>
    %c15 = arith.constant 15 : index
    %c0_16 = arith.constant 0 : index
    %21 = vector.load %arg2[%c15, %c0_16] : memref<24x128xf32, #tpu.memory_space<vmem>>, vector<1x32xf32>
    %cst_17 = arith.constant dense<0.000000e+00> : vector<16x96xf32>
    %22 = tpu.matmul %7, %10, %cst_17 {dimension_numbers = #tpu.dot_dimension_numbers<[1], [0], [0], [1], [0, 0, 1, 1], [], []>} : vector<16x32xf32>, vector<32x96xf32>, vector<16x96xf32> -> vector<16x96xf32>
    %23 = vector.broadcast %14 : vector<1x96xf32> to vector<16x96xf32>
    %24 = arith.addf %22, %23 : vector<16x96xf32>
    %25 = vector.extract_strided_slice %24 {offsets = [0, 0], sizes = [16, 32], strides = [1, 1]} : vector<16x96xf32> to vector<16x32xf32>
    %26 = vector.shape_cast %25 : vector<16x32xf32> to vector<2x8x32xf32>
    %27 = vector.extract_strided_slice %24 {offsets = [0, 32], sizes = [16, 32], strides = [1, 1]} : vector<16x96xf32> to vector<16x32xf32>
    %28 = vector.shape_cast %27 : vector<16x32xf32> to vector<2x8x32xf32>
    %29 = vector.extract_strided_slice %24 {offsets = [0, 64], sizes = [16, 32], strides = [1, 1]} : vector<16x96xf32> to vector<16x32xf32>
    %30 = vector.shape_cast %29 : vector<16x32xf32> to vector<2x8x32xf32>
    %31 = vector.shape_cast %26 : vector<2x8x32xf32> to vector<2x8x1x32xf32>
    %32 = vector.shape_cast %28 : vector<2x8x32xf32> to vector<2x1x8x32xf32>
    %33 = vector.broadcast %31 : vector<2x8x1x32xf32> to vector<2x8x8x32xf32>
    %34 = vector.broadcast %32 : vector<2x1x8x32xf32> to vector<2x8x8x32xf32>
    %35 = arith.mulf %33, %34 : vector<2x8x8x32xf32>
    %36 = vector.shape_cast %35 : vector<2x8x8x32xf32> to vector<128x32xf32>
    %cst_18 = arith.constant dense<0.000000e+00> : vector<128x4xf32>
    %37 = tpu.matmul %36, %8, %cst_18 {dimension_numbers = #tpu.dot_dimension_numbers<[1], [0], [0], [1], [0, 0, 1, 1], [], []>} : vector<128x32xf32>, vector<32x4xf32>, vector<128x4xf32> -> vector<128x4xf32>
    %38 = vector.shape_cast %37 : vector<128x4xf32> to vector<2x8x8x4xf32>
    %39 = math.exp %38 : vector<2x8x8x4xf32>
    %cst_19 = arith.constant dense<0.000000e+00> : vector<2x8x4xf32>
    %40 = vector.multi_reduction <add>, %39, %cst_19 [2] : vector<2x8x8x4xf32> to vector<2x8x4xf32>
    %41 = vector.shape_cast %40 : vector<2x8x4xf32> to vector<2x8x1x4xf32>
    %42 = tpu.reciprocal %41 : vector<2x8x1x4xf32> -> vector<2x8x1x4xf32>
    %43 = vector.broadcast %42 : vector<2x8x1x4xf32> to vector<2x8x8x4xf32>
    %44 = arith.mulf %39, %43 : vector<2x8x8x4xf32>
    %45 = vector.shape_cast %44 : vector<2x8x8x4xf32> to vector<128x4xf32>
    %cst_20 = arith.constant dense<0.000000e+00> : vector<128x32xf32>
    %46 = tpu.matmul %45, %9, %cst_20 {dimension_numbers = #tpu.dot_dimension_numbers<[1], [0], [0], [1], [0, 0, 1, 1], [], []>} : vector<128x4xf32>, vector<4x32xf32>, vector<128x32xf32> -> vector<128x32xf32>
    %47 = vector.shape_cast %46 : vector<128x32xf32> to vector<2x8x8x32xf32>
    %48 = vector.shape_cast %30 : vector<2x8x32xf32> to vector<2x1x8x32xf32>
    %49 = vector.broadcast %48 : vector<2x1x8x32xf32> to vector<2x8x8x32xf32>
    %50 = arith.mulf %47, %49 : vector<2x8x8x32xf32>
    %cst_21 = arith.constant dense<0.000000e+00> : vector<2x8x32xf32>
    %51 = vector.multi_reduction <add>, %50, %cst_21 [2] : vector<2x8x8x32xf32> to vector<2x8x32xf32>
    %52 = vector.shape_cast %51 : vector<2x8x32xf32> to vector<16x32xf32>
    %cst_22 = arith.constant dense<0.000000e+00> : vector<16x32xf32>
    %53 = tpu.matmul %52, %11, %cst_22 {dimension_numbers = #tpu.dot_dimension_numbers<[1], [0], [0], [1], [0, 0, 1, 1], [], []>} : vector<16x32xf32>, vector<32x32xf32>, vector<16x32xf32> -> vector<16x32xf32>
    %54 = vector.broadcast %15 : vector<1x32xf32> to vector<16x32xf32>
    %55 = arith.addf %53, %54 : vector<16x32xf32>
    %56 = arith.addf %7, %55 : vector<16x32xf32>
    %cst_23 = arith.constant dense<0.000000e+00> : vector<16xf32>
    %57 = vector.multi_reduction <add>, %56, %cst_23 [1] : vector<16x32xf32> to vector<16xf32>
    %58 = vector.shape_cast %57 : vector<16xf32> to vector<16x1xf32>
    %cst_24 = arith.constant 3.200000e+01 : f32
    %59 = vector.broadcast %cst_24 : f32 to vector<16x1xf32>
    %60 = arith.divf %58, %59 : vector<16x1xf32>
    %61 = vector.broadcast %60 : vector<16x1xf32> to vector<16x32xf32>
    %62 = arith.subf %56, %61 : vector<16x32xf32>
    %63 = arith.mulf %62, %62 : vector<16x32xf32>
    %cst_25 = arith.constant dense<0.000000e+00> : vector<16xf32>
    %64 = vector.multi_reduction <add>, %63, %cst_25 [1] : vector<16x32xf32> to vector<16xf32>
    %65 = vector.shape_cast %64 : vector<16xf32> to vector<16x1xf32>
    %cst_26 = arith.constant 3.200000e+01 : f32
    %66 = vector.broadcast %cst_26 : f32 to vector<16x1xf32>
    %67 = arith.divf %65, %66 : vector<16x1xf32>
    %68 = vector.broadcast %60 : vector<16x1xf32> to vector<16x32xf32>
    %69 = arith.subf %56, %68 : vector<16x32xf32>
    %cst_27 = arith.constant 9.99999974E-6 : f32
    %70 = vector.broadcast %cst_27 : f32 to vector<16x1xf32>
    %71 = arith.addf %67, %70 : vector<16x1xf32>
    %72 = math.rsqrt %71 : vector<16x1xf32>
    %73 = vector.broadcast %72 : vector<16x1xf32> to vector<16x32xf32>
    %74 = arith.mulf %69, %73 : vector<16x32xf32>
    %75 = vector.broadcast %16 : vector<1x32xf32> to vector<16x32xf32>
    %76 = arith.mulf %74, %75 : vector<16x32xf32>
    %77 = vector.broadcast %17 : vector<1x32xf32> to vector<16x32xf32>
    %78 = arith.addf %76, %77 : vector<16x32xf32>
    %cst_28 = arith.constant dense<0.000000e+00> : vector<16x64xf32>
    %79 = tpu.matmul %78, %12, %cst_28 {dimension_numbers = #tpu.dot_dimension_numbers<[1], [0], [0], [1], [0, 0, 1, 1], [], []>} : vector<16x32xf32>, vector<32x64xf32>, vector<16x64xf32> -> vector<16x64xf32>
    %80 = vector.broadcast %18 : vector<1x64xf32> to vector<16x64xf32>
    %81 = arith.addf %79, %80 : vector<16x64xf32>
    %cst_29 = arith.constant 0.000000e+00 : f32
    %82 = vector.broadcast %cst_29 : f32 to vector<16x64xf32>
    %83 = arith.maximumf %81, %82 : vector<16x64xf32>
    %cst_30 = arith.constant dense<0.000000e+00> : vector<16x32xf32>
    %84 = tpu.matmul %83, %13, %cst_30 {dimension_numbers = #tpu.dot_dimension_numbers<[1], [0], [0], [1], [0, 0, 1, 1], [], []>} : vector<16x64xf32>, vector<64x32xf32>, vector<16x32xf32> -> vector<16x32xf32>
    %85 = vector.broadcast %19 : vector<1x32xf32> to vector<16x32xf32>
    %86 = arith.addf %84, %85 : vector<16x32xf32>
    %87 = arith.addf %78, %86 : vector<16x32xf32>
    %cst_31 = arith.constant dense<0.000000e+00> : vector<16xf32>
    %88 = vector.multi_reduction <add>, %87, %cst_31 [1] : vector<16x32xf32> to vector<16xf32>
    %89 = vector.shape_cast %88 : vector<16xf32> to vector<16x1xf32>
    %cst_32 = arith.constant 3.200000e+01 : f32
    %90 = vector.broadcast %cst_32 : f32 to vector<16x1xf32>
    %91 = arith.divf %89, %90 : vector<16x1xf32>
    %92 = vector.broadcast %91 : vector<16x1xf32> to vector<16x32xf32>
    %93 = arith.subf %87, %92 : vector<16x32xf32>
    %94 = arith.mulf %93, %93 : vector<16x32xf32>
    %cst_33 = arith.constant dense<0.000000e+00> : vector<16xf32>
    %95 = vector.multi_reduction <add>, %94, %cst_33 [1] : vector<16x32xf32> to vector<16xf32>
    %96 = vector.shape_cast %95 : vector<16xf32> to vector<16x1xf32>
    %cst_34 = arith.constant 3.200000e+01 : f32
    %97 = vector.broadcast %cst_34 : f32 to vector<16x1xf32>
    %98 = arith.divf %96, %97 : vector<16x1xf32>
    %99 = vector.broadcast %91 : vector<16x1xf32> to vector<16x32xf32>
    %100 = arith.subf %87, %99 : vector<16x32xf32>
    %cst_35 = arith.constant 9.99999974E-6 : f32
    %101 = vector.broadcast %cst_35 : f32 to vector<16x1xf32>
    %102 = arith.addf %98, %101 : vector<16x1xf32>
    %103 = math.rsqrt %102 : vector<16x1xf32>
    %104 = vector.broadcast %103 : vector<16x1xf32> to vector<16x32xf32>
    %105 = arith.mulf %100, %104 : vector<16x32xf32>
    %106 = vector.broadcast %20 : vector<1x32xf32> to vector<16x32xf32>
    %107 = arith.mulf %105, %106 : vector<16x32xf32>
    %108 = vector.broadcast %21 : vector<1x32xf32> to vector<16x32xf32>
    %109 = arith.addf %107, %108 : vector<16x32xf32>
    %c288 = arith.constant 288 : index
    %c0_36 = arith.constant 0 : index
    %110 = vector.load %arg1[%c288, %c0_36] : memref<448x128xf32, #tpu.memory_space<vmem>>, vector<32x96xf32>
    %c320 = arith.constant 320 : index
    %c0_37 = arith.constant 0 : index
    %111 = vector.load %arg1[%c320, %c0_37] : memref<448x128xf32, #tpu.memory_space<vmem>>, vector<32x32xf32>
    %c352 = arith.constant 352 : index
    %c0_38 = arith.constant 0 : index
    %112 = vector.load %arg1[%c352, %c0_38] : memref<448x128xf32, #tpu.memory_space<vmem>>, vector<32x64xf32>
    %c384 = arith.constant 384 : index
    %c0_39 = arith.constant 0 : index
    %113 = vector.load %arg1[%c384, %c0_39] : memref<448x128xf32, #tpu.memory_space<vmem>>, vector<64x32xf32>
    %c16 = arith.constant 16 : index
    %c0_40 = arith.constant 0 : index
    %114 = vector.load %arg2[%c16, %c0_40] : memref<24x128xf32, #tpu.memory_space<vmem>>, vector<1x96xf32>
    %c17 = arith.constant 17 : index
    %c0_41 = arith.constant 0 : index
    %115 = vector.load %arg2[%c17, %c0_41] : memref<24x128xf32, #tpu.memory_space<vmem>>, vector<1x32xf32>
    %c18 = arith.constant 18 : index
    %c0_42 = arith.constant 0 : index
    %116 = vector.load %arg2[%c18, %c0_42] : memref<24x128xf32, #tpu.memory_space<vmem>>, vector<1x32xf32>
    %c19 = arith.constant 19 : index
    %c0_43 = arith.constant 0 : index
    %117 = vector.load %arg2[%c19, %c0_43] : memref<24x128xf32, #tpu.memory_space<vmem>>, vector<1x32xf32>
    %c20 = arith.constant 20 : index
    %c0_44 = arith.constant 0 : index
    %118 = vector.load %arg2[%c20, %c0_44] : memref<24x128xf32, #tpu.memory_space<vmem>>, vector<1x64xf32>
    %c21 = arith.constant 21 : index
    %c0_45 = arith.constant 0 : index
    %119 = vector.load %arg2[%c21, %c0_45] : memref<24x128xf32, #tpu.memory_space<vmem>>, vector<1x32xf32>
    %c22 = arith.constant 22 : index
    %c0_46 = arith.constant 0 : index
    %120 = vector.load %arg2[%c22, %c0_46] : memref<24x128xf32, #tpu.memory_space<vmem>>, vector<1x32xf32>
    %c23 = arith.constant 23 : index
    %c0_47 = arith.constant 0 : index
    %121 = vector.load %arg2[%c23, %c0_47] : memref<24x128xf32, #tpu.memory_space<vmem>>, vector<1x32xf32>
    %cst_48 = arith.constant dense<0.000000e+00> : vector<16x96xf32>
    %122 = tpu.matmul %109, %110, %cst_48 {dimension_numbers = #tpu.dot_dimension_numbers<[1], [0], [0], [1], [0, 0, 1, 1], [], []>} : vector<16x32xf32>, vector<32x96xf32>, vector<16x96xf32> -> vector<16x96xf32>
    %123 = vector.broadcast %114 : vector<1x96xf32> to vector<16x96xf32>
    %124 = arith.addf %122, %123 : vector<16x96xf32>
    %125 = vector.extract_strided_slice %124 {offsets = [0, 0], sizes = [16, 32], strides = [1, 1]} : vector<16x96xf32> to vector<16x32xf32>
    %126 = vector.shape_cast %125 : vector<16x32xf32> to vector<2x8x32xf32>
    %127 = vector.extract_strided_slice %124 {offsets = [0, 32], sizes = [16, 32], strides = [1, 1]} : vector<16x96xf32> to vector<16x32xf32>
    %128 = vector.shape_cast %127 : vector<16x32xf32> to vector<2x8x32xf32>
    %129 = vector.extract_strided_slice %124 {offsets = [0, 64], sizes = [16, 32], strides = [1, 1]} : vector<16x96xf32> to vector<16x32xf32>
    %130 = vector.shape_cast %129 : vector<16x32xf32> to vector<2x8x32xf32>
    %131 = vector.shape_cast %126 : vector<2x8x32xf32> to vector<2x8x1x32xf32>
    %132 = vector.shape_cast %128 : vector<2x8x32xf32> to vector<2x1x8x32xf32>
    %133 = vector.broadcast %131 : vector<2x8x1x32xf32> to vector<2x8x8x32xf32>
    %134 = vector.broadcast %132 : vector<2x1x8x32xf32> to vector<2x8x8x32xf32>
    %135 = arith.mulf %133, %134 : vector<2x8x8x32xf32>
    %136 = vector.shape_cast %135 : vector<2x8x8x32xf32> to vector<128x32xf32>
    %cst_49 = arith.constant dense<0.000000e+00> : vector<128x4xf32>
    %137 = tpu.matmul %136, %8, %cst_49 {dimension_numbers = #tpu.dot_dimension_numbers<[1], [0], [0], [1], [0, 0, 1, 1], [], []>} : vector<128x32xf32>, vector<32x4xf32>, vector<128x4xf32> -> vector<128x4xf32>
    %138 = vector.shape_cast %137 : vector<128x4xf32> to vector<2x8x8x4xf32>
    %139 = math.exp %138 : vector<2x8x8x4xf32>
    %cst_50 = arith.constant dense<0.000000e+00> : vector<2x8x4xf32>
    %140 = vector.multi_reduction <add>, %139, %cst_50 [2] : vector<2x8x8x4xf32> to vector<2x8x4xf32>
    %141 = vector.shape_cast %140 : vector<2x8x4xf32> to vector<2x8x1x4xf32>
    %142 = tpu.reciprocal %141 : vector<2x8x1x4xf32> -> vector<2x8x1x4xf32>
    %143 = vector.broadcast %142 : vector<2x8x1x4xf32> to vector<2x8x8x4xf32>
    %144 = arith.mulf %139, %143 : vector<2x8x8x4xf32>
    %145 = vector.shape_cast %144 : vector<2x8x8x4xf32> to vector<128x4xf32>
    %cst_51 = arith.constant dense<0.000000e+00> : vector<128x32xf32>
    %146 = tpu.matmul %145, %9, %cst_51 {dimension_numbers = #tpu.dot_dimension_numbers<[1], [0], [0], [1], [0, 0, 1, 1], [], []>} : vector<128x4xf32>, vector<4x32xf32>, vector<128x32xf32> -> vector<128x32xf32>
    %147 = vector.shape_cast %146 : vector<128x32xf32> to vector<2x8x8x32xf32>
    %148 = vector.shape_cast %130 : vector<2x8x32xf32> to vector<2x1x8x32xf32>
    %149 = vector.broadcast %148 : vector<2x1x8x32xf32> to vector<2x8x8x32xf32>
    %150 = arith.mulf %147, %149 : vector<2x8x8x32xf32>
    %cst_52 = arith.constant dense<0.000000e+00> : vector<2x8x32xf32>
    %151 = vector.multi_reduction <add>, %150, %cst_52 [2] : vector<2x8x8x32xf32> to vector<2x8x32xf32>
    %152 = vector.shape_cast %151 : vector<2x8x32xf32> to vector<16x32xf32>
    %cst_53 = arith.constant dense<0.000000e+00> : vector<16x32xf32>
    %153 = tpu.matmul %152, %111, %cst_53 {dimension_numbers = #tpu.dot_dimension_numbers<[1], [0], [0], [1], [0, 0, 1, 1], [], []>} : vector<16x32xf32>, vector<32x32xf32>, vector<16x32xf32> -> vector<16x32xf32>
    %154 = vector.broadcast %115 : vector<1x32xf32> to vector<16x32xf32>
    %155 = arith.addf %153, %154 : vector<16x32xf32>
    %156 = arith.addf %109, %155 : vector<16x32xf32>
    %cst_54 = arith.constant dense<0.000000e+00> : vector<16xf32>
    %157 = vector.multi_reduction <add>, %156, %cst_54 [1] : vector<16x32xf32> to vector<16xf32>
    %158 = vector.shape_cast %157 : vector<16xf32> to vector<16x1xf32>
    %cst_55 = arith.constant 3.200000e+01 : f32
    %159 = vector.broadcast %cst_55 : f32 to vector<16x1xf32>
    %160 = arith.divf %158, %159 : vector<16x1xf32>
    %161 = vector.broadcast %160 : vector<16x1xf32> to vector<16x32xf32>
    %162 = arith.subf %156, %161 : vector<16x32xf32>
    %163 = arith.mulf %162, %162 : vector<16x32xf32>
    %cst_56 = arith.constant dense<0.000000e+00> : vector<16xf32>
    %164 = vector.multi_reduction <add>, %163, %cst_56 [1] : vector<16x32xf32> to vector<16xf32>
    %165 = vector.shape_cast %164 : vector<16xf32> to vector<16x1xf32>
    %cst_57 = arith.constant 3.200000e+01 : f32
    %166 = vector.broadcast %cst_57 : f32 to vector<16x1xf32>
    %167 = arith.divf %165, %166 : vector<16x1xf32>
    %168 = vector.broadcast %160 : vector<16x1xf32> to vector<16x32xf32>
    %169 = arith.subf %156, %168 : vector<16x32xf32>
    %cst_58 = arith.constant 9.99999974E-6 : f32
    %170 = vector.broadcast %cst_58 : f32 to vector<16x1xf32>
    %171 = arith.addf %167, %170 : vector<16x1xf32>
    %172 = math.rsqrt %171 : vector<16x1xf32>
    %173 = vector.broadcast %172 : vector<16x1xf32> to vector<16x32xf32>
    %174 = arith.mulf %169, %173 : vector<16x32xf32>
    %175 = vector.broadcast %116 : vector<1x32xf32> to vector<16x32xf32>
    %176 = arith.mulf %174, %175 : vector<16x32xf32>
    %177 = vector.broadcast %117 : vector<1x32xf32> to vector<16x32xf32>
    %178 = arith.addf %176, %177 : vector<16x32xf32>
    %cst_59 = arith.constant dense<0.000000e+00> : vector<16x64xf32>
    %179 = tpu.matmul %178, %112, %cst_59 {dimension_numbers = #tpu.dot_dimension_numbers<[1], [0], [0], [1], [0, 0, 1, 1], [], []>} : vector<16x32xf32>, vector<32x64xf32>, vector<16x64xf32> -> vector<16x64xf32>
    %180 = vector.broadcast %118 : vector<1x64xf32> to vector<16x64xf32>
    %181 = arith.addf %179, %180 : vector<16x64xf32>
    %cst_60 = arith.constant 0.000000e+00 : f32
    %182 = vector.broadcast %cst_60 : f32 to vector<16x64xf32>
    %183 = arith.maximumf %181, %182 : vector<16x64xf32>
    %cst_61 = arith.constant dense<0.000000e+00> : vector<16x32xf32>
    %184 = tpu.matmul %183, %113, %cst_61 {dimension_numbers = #tpu.dot_dimension_numbers<[1], [0], [0], [1], [0, 0, 1, 1], [], []>} : vector<16x64xf32>, vector<64x32xf32>, vector<16x32xf32> -> vector<16x32xf32>
    %185 = vector.broadcast %119 : vector<1x32xf32> to vector<16x32xf32>
    %186 = arith.addf %184, %185 : vector<16x32xf32>
    %187 = arith.addf %178, %186 : vector<16x32xf32>
    %cst_62 = arith.constant dense<0.000000e+00> : vector<16xf32>
    %188 = vector.multi_reduction <add>, %187, %cst_62 [1] : vector<16x32xf32> to vector<16xf32>
    %189 = vector.shape_cast %188 : vector<16xf32> to vector<16x1xf32>
    %cst_63 = arith.constant 3.200000e+01 : f32
    %190 = vector.broadcast %cst_63 : f32 to vector<16x1xf32>
    %191 = arith.divf %189, %190 : vector<16x1xf32>
    %192 = vector.broadcast %191 : vector<16x1xf32> to vector<16x32xf32>
    %193 = arith.subf %187, %192 : vector<16x32xf32>
    %194 = arith.mulf %193, %193 : vector<16x32xf32>
    %cst_64 = arith.constant dense<0.000000e+00> : vector<16xf32>
    %195 = vector.multi_reduction <add>, %194, %cst_64 [1] : vector<16x32xf32> to vector<16xf32>
    %196 = vector.shape_cast %195 : vector<16xf32> to vector<16x1xf32>
    %cst_65 = arith.constant 3.200000e+01 : f32
    %197 = vector.broadcast %cst_65 : f32 to vector<16x1xf32>
    %198 = arith.divf %196, %197 : vector<16x1xf32>
    %199 = vector.broadcast %191 : vector<16x1xf32> to vector<16x32xf32>
    %200 = arith.subf %187, %199 : vector<16x32xf32>
    %cst_66 = arith.constant 9.99999974E-6 : f32
    %201 = vector.broadcast %cst_66 : f32 to vector<16x1xf32>
    %202 = arith.addf %198, %201 : vector<16x1xf32>
    %203 = math.rsqrt %202 : vector<16x1xf32>
    %204 = vector.broadcast %203 : vector<16x1xf32> to vector<16x32xf32>
    %205 = arith.mulf %200, %204 : vector<16x32xf32>
    %206 = vector.broadcast %120 : vector<1x32xf32> to vector<16x32xf32>
    %207 = arith.mulf %205, %206 : vector<16x32xf32>
    %208 = vector.broadcast %121 : vector<1x32xf32> to vector<16x32xf32>
    %209 = arith.addf %207, %208 : vector<16x32xf32>
    %c56 = arith.constant 56 : index
    %c0_67 = arith.constant 0 : index
    %210 = vector.load %arg1[%c56, %c0_67] : memref<448x128xf32, #tpu.memory_space<vmem>>, vector<32x128xf32>
    %c0_68 = arith.constant 0 : index
    %c0_69 = arith.constant 0 : index
    %211 = vector.load %arg2[%c0_68, %c0_69] : memref<24x128xf32, #tpu.memory_space<vmem>>, vector<1x128xf32>
    %cst_70 = arith.constant dense<0.000000e+00> : vector<16x128xf32>
    %212 = tpu.matmul %209, %210, %cst_70 {dimension_numbers = #tpu.dot_dimension_numbers<[1], [0], [0], [1], [0, 0, 1, 1], [], []>} : vector<16x32xf32>, vector<32x128xf32>, vector<16x128xf32> -> vector<16x128xf32>
    %213 = vector.broadcast %211 : vector<1x128xf32> to vector<16x128xf32>
    %214 = arith.addf %212, %213 : vector<16x128xf32>
    %c0_71 = arith.constant 0 : index
    %c0_72 = arith.constant 0 : index
    %215 = vector.load %arg3[%c0_71, %c0_72] : memref<16x128xf32, #tpu.memory_space<vmem>>, vector<16x128xf32>
    tpu.vector_store %arg3[%c0_71, %c0_72], %214 {strides = array<i32>} : memref<16x128xf32, #tpu.memory_space<vmem>>, vector<16x128xf32>,
    return
  }
}

</mosaic_0001>

<bundles_post_ra>
// kernel: transformer_classifier_forward.1
= control target key start
LH: loop header
LB: loop body
LE: loop exit
PB: predicated region body
PF: predicated region fallthrough
CT: control target
= control target key end

     0   :  { %8 = vsyncpa [#allocation3], 0  ;;  %s3793_s12 = smov [#allocation2]   ;;  %s4316_s0 = inlined_call_operand.vmem [shape: s32[16,1], index: 0, kind: input, shape index: {}]   ;;  %s4317_s1 = inlined_call_operand.hbm [shape: f32[448,128], index: 1, kind: input, shape index: {}]   ;;  %s4318_s2 = inlined_call_operand.vmem [shape: f32[24,128], index: 2, kind: input, shape index: {}]   ;;  %s4319_s3 = inlined_call_operand.vmem [shape: f32[16,128], index: 3, kind: output, shape index: {}]  }
   0x1   :  { %s16_s13 = sshll.u32 %s3793_s12, 4  ;;  %s3769_s16 = scalar_lea.hbm %s4317_s1, 7168  ;;  %s17_s13 = int_to_ptr.vmem [resolvable:$true] %s16_s13 }
   0x2   :  { %p3770_p0 = scmp.ne.s32.totalorder %s4317_s1, %s3769_s16  ;;  %p3773_p1 = scmp.lt.u32.totalorder %s3769_s16, %s4317_s1 }
   0x4   :  { %p3775_p2 = pnand %p3773_p1, %p3770_p0 }
   0x6   :  { %3778 = shalt.err (!%p3775_p2)
}
   0x7   :  { %s3779_s21 = scalar_lea.vmem %s17_s13, 7168  ;;  %p3784_p4 = scmp.lt.s32.totalorder %s17_s13, %s17_s13 }
   0x8   :  { %p3780_p3 = scmp.ne.s32.totalorder %s17_s13, %s3779_s21  ;;  %p3785_p5 = scmp.lt.s32.totalorder %s3779_s21, %s3779_s21 }
   0xa   :  { %p3786_p6 = por %p3785_p5, %p3784_p4 }
   0xc   :  { %p3787_p7 = pnand %p3786_p6, %p3780_p3 }
   0xe   :  { %3790 = shalt.err (!%p3787_p7)
}
   0xf   :  { %s3794_s22 = smov 128   ;;  %s3795_s23 = smov 8  }
  0x10   :  { %22 = dma.hbm_to_vmem [thread:$0]  %s4317_s1, 7168, %s17_s13, [#allocation3], %s3794_s22, %s3794_s22, %s3795_s23  }
  0x11   :  { %3791 = dma.done.wait [#allocation3], 7168  }
  0x12   :  { %3792 = vsyncadd [#allocation3], 4294960128  ;;  %v3796_v0 = vmov 0   ;;  %v28_v1 = vld [vmem:[%s4316_s0] sm:$0xff]  ;;  %v44_v2 = vld [vmem:[#allocation2] sm:$0xff]  ;;  %v30_v19 = vlaneseq  ;;  %vm51_vm0 = vcmask 457728  }
  0x13   :  { %3624 = vset.pattern.permute.xlu0 %v3796_v0  ;;  %v45_v3 = vld [vmem:[#allocation2 + $0x8] sm:$0xff]  ;;  %v46_v4 = vld [vmem:[#allocation2 + $0x10] sm:$0xff]  ;;  %v47_v5 = vld [vmem:[#allocation2 + $0x18] sm:$0xff]  ;;  %v3797_v22 = vmov 0.0   ;;  %vm170_vm3 = vcmask 261120   ;;  %s3798_s30 = smov 64  }
  0x14   :  { %33 = vperm.xlu0 %3624, %v28_v1   ;;  %v29_v6 = vld [vmem:[%s4316_s0 + $0x8] sm:$0xff]  ;;  %v3500_v7 = vpack.c.bf16 %v45_v3, %v44_v2  ;;  %v3504_v8 = vpack.c.bf16 %v47_v5, %v46_v4  ;;  %v48_v9 = vld [vmem:[#allocation2 + $0x20] sm:$0xff]  ;;  %v49_v10 = vld [vmem:[#allocation2 + $0x28] sm:$0xff]  ;;  %v31_v20 = vand.u32 127, %v30_v19  ;;  %s3799_s4 = smov 96   ;;  %v259_v42 = vshrl.u32 %v30_v19, 7 }
  0x15   :  { %v3508_v11 = vpack.c.bf16 %v49_v10, %v48_v9  ;;  %v138_v12 = vld [vmem:[#allocation2 + $0x80] sm:$0xff]  ;;  %v139_v13 = vld [vmem:[#allocation2 + $0x88] sm:$0xff]  ;;  %v140_v14 = vld [vmem:[#allocation2 + $0x90] sm:$0xff]  ;;  %v3800_v39 = vmov 1966171168   ;;  %vm872_vm4 = vcmask 1043456  }
  0x16   :  { %3501 = vmatprep.subr.bf16.mxu0 %v3500_v7  ;;  %v3512_v15 = vpack.c.bf16 %v139_v13, %v138_v12  ;;  %v141_v16 = vld [vmem:[#allocation2 + $0x98] sm:$0xff]  ;;  %v50_v18 = vld [vmem:[#allocation2 + $0x30] sm:$0xff]  ;;  %v134_v29 = vld [vmem:[#allocation2 + $0x60] sm:$0xff]  ;;  %v256_v40 = vunpack.c.l.s4 %v3800_v39  ;;  %v3866_v48 = vsub.s32 0, %v259_v42  ;;  %vm679_vm5 = vcmask 31744  }
  0x17   :  { %3503 = vmatpush3.bf16.msra.mxu0 %v3500_v7  ;;  %v3516_v17 = vpack.c.bf16 %v141_v16, %v140_v14  ;;  %v133_v28 = vld [vmem:[#allocation2 + $0x58] sm:$0xff]  ;;  %v135_v30 = vld [vmem:[#allocation2 + $0x68] sm:$0xff]  ;;  %v136_v32 = vld [vmem:[#allocation2 + $0x70] sm:$0xff]  ;;  %vm1175_vm6 = vcmask 1041409   ;;  %vm1177_vm7 = vcmask 1042434   ;;  %vm1179_vm8 = vcmask 1043459  }
  0x18   :  { %36 = vperm.xlu0 %3624, %v29_v6   ;;  %3505 = vmatprep.subr.bf16.mxu0 %v3504_v8  ;;  %v3847_v31 = vpack.c.bf16 %v134_v29, %v133_v28  ;;  %v3849_v33 = vpack.c.bf16 %v136_v32, %v135_v30  ;;  %v3006_v34 = vld [vmem:[%s4318_s2 + $0x8] ss:$0 sm:$0xff]  ;;  %v257_v41 = vunpack.c.0.s8 %v256_v40  ;;  %vm1181_vm9 = vcmask 1044484  }
  0x19   :  { %3513 = vmatprep.subr.bf16.mxu1 %v3512_v15  ;;  %vm1183_vm10 = vcmask 1045509   ;;  %vm1185_vm11 = vcmask 1046534   ;;  %vm1187_vm12 = vcmask 1047559   ;;  %vm1407_vm13 = vcmask 523264  }
  0x1a   :  { %3515 = vmatpush3.bf16.msra.mxu1 %v3512_v15  ;;  %v3862_v43 = vsub.s32 %v257_v41, %v259_v42 }
  0x1b   :  { %3507 = vmatpush3.bf16.msra.mxu0 %v3504_v8  ;;  %3517 = vmatprep.subr.bf16.mxu1 %v3516_v17 }
  0x1c   :  { %3509 = vmatprep.subr.bf16.mxu0 %v3508_v11 }
  0x1e   :  { %3519 = vmatpush3.bf16.msra.mxu1 %v3516_v17 }
  0x1f   :  { %3511 = vmatpush3.bf16.msra.mxu0 %v3508_v11  ;;  %3521 = vmatprep.subr.bf16.mxu1 %v3847_v31 }
  0x20   :  { %3264 = vmatprep.subr.mxu0 %v50_v18 }
  0x23   :  { %3265 = vmatpush3.msra.mxu0 %v50_v18 }
  0x93   :  { %v34_v21 = vpop.permute.xlu0 %33 }
  0x94   :  { %vm38_vm1 = vcmp.eq.s32.totalorder %v31_v20, %v34_v21 }
  0x95   :  { %v3002_v23 = vsel %vm38_vm1, 1.0, %v3797_v22 }
  0x96   :  { %3266 = vmatprep.mubr.msk.f32.mxu0 %vm51_vm0, %v3002_v23 }
  0x97   :  { %v37_v24 = vpop.permute.xlu0 %36 }
  0x98   :  { %vm39_vm2 = vcmp.eq.s32.totalorder %v31_v20, %v37_v24 }
  0x99   :  { %v3003_v25 = vsel %vm39_vm2, 1.0, %v3797_v22 }
  0x9a   :  { %3267 = vmatmul.mubr.msk.f32.vlgmr.msra.gmra.mrb[0].mxu0 %vm51_vm0, %v3003_v25 }
 0x16d   :  { %v3839_v26 = vpop.f32.mrb[0].mxu0 }
 0x16e   :  { %v3841_v27 = vpop.f32.mrb[1].mxu0 }
 0x16f   :  { %3277 = vmatprep.mubr.msk.f32.mxu1 %vm170_vm3, %v3841_v27 }
 0x170   :  { %3278 = vmatmul.mubr.msk.f32.vlgmr.msra.gmra.mrb[0].mxu1 %vm170_vm3, %v3839_v26 }
 0x171   :  { %3523 = vmatpush3.bf16.msra.mxu1 %v3847_v31 }
 0x172   :  { %3525 = vmatprep.subr.bf16.mxu1 %v3849_v33 }
 0x175   :  { %3527 = vmatpush3.bf16.msra.mxu1 %v3849_v33 }
 0x243   :  { %v3279_v35 = vpop.f32.mrb[0].mxu1 }
 0x244   :  { %v243_v36 = vpop.f32.mrb[1].mxu1  ;;  %v249_v38 = vadd.f32 %v3279_v35, %v3006_v34 }
 0x245   :  { %v244_v37 = vadd.f32 %v3006_v34, %v243_v36 }
 0x246   :  { %v310_v62 = vrot.slane %v249_v38, %v3862_v43  ;;  %v303_v5 = vcombine.high %v249_v38, %v249_v38 }
 0x247   :  { %1021 = vrot.lane.b32.xlu0 %v244_v37, %s3798_s30  ;;  %432 = vrot.lane.b32.xlu1 %v244_v37, %s3799_s4  ;;  %v261_v44 = vrot.slane %v244_v37, %v3862_v43  ;;  %v254_v46 = vcombine.high %v244_v37, %v244_v37 }
 0x248   :  { %v318_v6 = vcombine.high %v310_v62, %v310_v62  ;;  %v326_v9 = vrot.slane %v310_v62, %v3862_v43  ;;  %v317_v13 = vrot.slane %v303_v5, %v3862_v43 }
 0x249   :  { %v269_v45 = vcombine.high %v261_v44, %v261_v44  ;;  %v277_v47 = vrot.slane %v261_v44, %v3862_v43  ;;  %v268_v50 = vrot.slane %v254_v46, %v3862_v43  ;;  %v3910_v46 = vld [vmem:[#allocation2 + $0x78] sm:$0xf] }
 0x24a   :  { %v340_v16 = vrot.slane %v318_v6, %v3862_v43  ;;  %v387_v17 = vrot.slane %v326_v9, %v3866_v48  ;;  %v348_v18 = vcombine.high %v326_v9, %v326_v9  ;;  %v319_v21 = vcombine.high %v317_v13, %v317_v13  ;;  %3312 = vmatprep.subr.msk.mxu0 %vm872_vm4, %v3910_v46 }
 0x24b   :  { %434 = vrot.lane.b32.xlu1 %v249_v38, %s3799_s4  ;;  %v291_v49 = vrot.slane %v269_v45, %v3862_v43  ;;  %v299_v51 = vcombine.high %v277_v47, %v277_v47  ;;  %v355_v52 = vrot.slane %v277_v47, %v3866_v48  ;;  %v270_v54 = vcombine.high %v268_v50, %v268_v50 }
 0x24c   :  { %v284_v60 = vrot.slane %v268_v50, %v3862_v43  ;;  %v391_v22 = vrot.slane %v340_v16, %v3866_v48  ;;  %v350_v23 = vcombine.high %v340_v16, %v340_v16  ;;  %v395_v24 = vrot.slane %v348_v18, %v3866_v48  ;;  %3313 = vmatpush3.msk.msra.mxu0 %vm872_vm4, %v3910_v46 }
 0x24d   :  { %v359_v53 = vrot.slane %v291_v49, %v3866_v48  ;;  %v301_v56 = vcombine.high %v291_v49, %v291_v49  ;;  %v363_v59 = vrot.slane %v299_v51, %v3866_v48  ;;  %v298_v0 = vrot.slane %v270_v54, %v3862_v43 }
 0x24e   :  { %v371_v1 = vrot.slane %v284_v60, %v3866_v48  ;;  %v300_v2 = vcombine.high %v284_v60, %v284_v60  ;;  %v333_v25 = vrot.slane %v317_v13, %v3862_v43  ;;  %v399_v30 = vrot.slane %v350_v23, %v3866_v48 }
 0x24f   :  { %1023 = vrot.lane.b32.xlu1 %v249_v38, %s3798_s30  ;;  %v367_v63 = vrot.slane %v301_v56, %v3866_v48  ;;  %v375_v7 = vrot.slane %v298_v0, %v3866_v48  ;;  %v302_v8 = vcombine.high %v298_v0, %v298_v0  ;;  %v347_v32 = vrot.slane %v319_v21, %v3862_v43 }
 0x250   :  { %v379_v10 = vrot.slane %v300_v2, %v3866_v48  ;;  %v403_v34 = vrot.slane %v333_v25, %v3866_v48  ;;  %v349_v35 = vcombine.high %v333_v25, %v333_v25 }
 0x251   :  { %v383_v15 = vrot.slane %v302_v8, %v3866_v48  ;;  %v407_v38 = vrot.slane %v347_v32, %v3866_v48  ;;  %v351_v39 = vcombine.high %v347_v32, %v347_v32 }
 0x252   :  { %v411_v40 = vrot.slane %v349_v35, %v3866_v48 }
 0x253   :  { %v415_v44 = vrot.slane %v351_v39, %v3866_v48 }
 0x2b9   :  { %v433_v55 = vpop.permute.xlu1 %432 }
 0x2ba   :  { %v438_v57 = vmul.f32 %v433_v55, %v355_v52  ;;  %v439_v58 = vmul.f32 %v433_v55, %v359_v53  ;;  %v440_v61 = vmul.f32 %v433_v55, %v363_v59  ;;  %v441_v3 = vmul.f32 %v433_v55, %v367_v63 }
 0x2bb   :  { %v442_v4 = vmul.f32 %v433_v55, %v371_v1  ;;  %v443_v11 = vmul.f32 %v433_v55, %v375_v7  ;;  %v444_v12 = vmul.f32 %v433_v55, %v379_v10  ;;  %v445_v19 = vmul.f32 %v433_v55, %v383_v15 }
 0x2bc   :  { %3288 = vmatprep.mubr.msk.f32.mxu1 %vm170_vm3, %v438_v57 }
 0x2bd   :  { %3289 = vmatmul.mubr.msk.f32.vlgmr.msra.gmra.mrb[2].mxu1 %vm170_vm3, %v439_v58  ;;  %v435_v14 = vpop.permute.xlu1 %434 }
 0x2be   :  { %3291 = vmatprep.mubr.msk.f32.mxu1 %vm170_vm3, %v440_v61  ;;  %v446_v20 = vmul.f32 %v435_v14, %v387_v17  ;;  %v447_v28 = vmul.f32 %v435_v14, %v391_v22  ;;  %v448_v29 = vmul.f32 %v435_v14, %v395_v24  ;;  %v449_v36 = vmul.f32 %v435_v14, %v399_v30 }
 0x2bf   :  { %v450_v37 = vmul.f32 %v435_v14, %v403_v34  ;;  %v451_v41 = vmul.f32 %v435_v14, %v407_v38  ;;  %v452_v42 = vmul.f32 %v435_v14, %v411_v40  ;;  %v453_v45 = vmul.f32 %v435_v14, %v415_v44 }
 0x2c1   :  { %3292 = vmatmul.mubr.msk.f32.gmra.mrb[4].mxu1 %vm170_vm3, %v441_v3 }
 0x2c2   :  { %3294 = vmatprep.mubr.msk.f32.mxu1 %vm170_vm3, %v442_v4 }
 0x2c5   :  { %3295 = vmatmul.mubr.msk.f32.gmra.mrb[6].mxu1 %vm170_vm3, %v443_v11 }
 0x2c6   :  { %3297 = vmatprep.mubr.msk.f32.mxu1 %vm170_vm3, %v444_v12 }
 0x2c9   :  { %3298 = vmatmul.mubr.msk.f32.gmra.mrb[8].mxu1 %vm170_vm3, %v445_v19 }
 0x2ca   :  { %3300 = vmatprep.mubr.msk.f32.mxu1 %vm170_vm3, %v446_v20 }
 0x2cd   :  { %3301 = vmatmul.mubr.msk.f32.gmra.mrb[10].mxu1 %vm170_vm3, %v447_v28 }
 0x2ce   :  { %3303 = vmatprep.mubr.msk.f32.mxu1 %vm170_vm3, %v448_v29 }
 0x2d1   :  { %3304 = vmatmul.mubr.msk.f32.gmra.mrb[12].mxu1 %vm170_vm3, %v449_v36 }
 0x2d2   :  { %3306 = vmatprep.mubr.msk.f32.mxu1 %vm170_vm3, %v450_v37 }
 0x2d5   :  { %3307 = vmatmul.mubr.msk.f32.gmra.mrb[14].mxu1 %vm170_vm3, %v451_v41 }
 0x2d6   :  { %3309 = vmatprep.mubr.msk.f32.mxu1 %vm170_vm3, %v452_v42 }
 0x2d9   :  { %3310 = vmatmul.mubr.msk.f32.gmra.mrb[16].mxu1 %vm170_vm3, %v453_v45 }
 0x390   :  { %v3290_v47 = vpop.f32.mrb[2].mxu1 }
 0x391   :  { %v649_v49 = vmul.f32 1.442695, %v3290_v47  ;;  %v568_v50 = vpop.f32.mrb[3].mxu1 }
 0x392   :  { %v647_v51 = vmul.f32 1.442695, %v568_v50 }
 0x393   :  { %3625 = vpow2.f32 %v649_v49 }
 0x394   :  { %3627 = vpow2.f32 %v647_v51  ;;  %v3293_v52 = vpop.f32.mrb[4].mxu1 }
 0x395   :  { %v653_v53 = vmul.f32 1.442695, %v3293_v52  ;;  %v578_v54 = vpop.f32.mrb[5].mxu1 }
 0x396   :  { %v651_v55 = vmul.f32 1.442695, %v578_v54 }
 0x397   :  { %3629 = vpow2.f32 %v653_v53 }
 0x398   :  { %3631 = vpow2.f32 %v651_v55  ;;  %v3296_v56 = vpop.f32.mrb[6].mxu1 }
 0x399   :  { %v657_v57 = vmul.f32 1.442695, %v3296_v56  ;;  %v588_v58 = vpop.f32.mrb[7].mxu1 }
 0x39a   :  { %v655_v59 = vmul.f32 1.442695, %v588_v58 }
 0x39b   :  { %3633 = vpow2.f32 %v657_v57 }
 0x39c   :  { %3635 = vpow2.f32 %v655_v59  ;;  %v3299_v60 = vpop.f32.mrb[8].mxu1 }
 0x39d   :  { %v3916_v61 = vpop.eup %3625  ;;  %v661_v62 = vmul.f32 1.442695, %v3299_v60  ;;  %v598_v63 = vpop.f32.mrb[9].mxu1 }
 0x39e   :  { %v3918_v0 = vpop.eup %3627  ;;  %v687_v1 = vsel %vm679_vm5, %v3916_v61, 0.0  ;;  %v659_v2 = vmul.f32 1.442695, %v598_v63 }
 0x39f   :  { %v688_v3 = vrot.slane %v687_v1, 4  ;;  %v680_v4 = vsel %vm679_vm5, %v3918_v0, 0.0  ;;  %3637 = vpow2.f32 %v661_v62 }
 0x3a0   :  { %v681_v5 = vrot.slane %v680_v4, 4  ;;  %3639 = vpow2.f32 %v659_v2  ;;  %v3302_v6 = vpop.f32.mrb[10].mxu1 }
 0x3a1   :  { %v3924_v7 = vpop.eup %3629  ;;  %v689_v8 = vadd.f32 %v688_v3, %v687_v1  ;;  %v665_v9 = vmul.f32 1.442695, %v3302_v6  ;;  %v608_v10 = vpop.f32.mrb[11].mxu1 }
 0x3a2   :  { %v3926_v11 = vpop.eup %3631  ;;  %v682_v12 = vadd.f32 %v681_v5, %v680_v4  ;;  %v701_v13 = vsel %vm679_vm5, %v3924_v7, 0.0  ;;  %v663_v14 = vmul.f32 1.442695, %v608_v10 }
 0x3a3   :  { %v690_v15 = vrot.slane %v689_v8, 2  ;;  %v702_v16 = vrot.slane %v701_v13, 4  ;;  %v694_v17 = vsel %vm679_vm5, %v3926_v11, 0.0  ;;  %3641 = vpow2.f32 %v665_v9 }
 0x3a4   :  { %v683_v18 = vrot.slane %v682_v12, 2  ;;  %v695_v19 = vrot.slane %v694_v17, 4  ;;  %3643 = vpow2.f32 %v663_v14  ;;  %v3305_v20 = vpop.f32.mrb[12].mxu1 }
 0x3a5   :  { %v3932_v21 = vpop.eup %3633  ;;  %v691_v22 = vadd.f32 %v690_v15, %v689_v8  ;;  %v703_v23 = vadd.f32 %v702_v16, %v701_v13  ;;  %v669_v24 = vmul.f32 1.442695, %v3305_v20  ;;  %v618_v25 = vpop.f32.mrb[13].mxu1 }
 0x3a6   :  { %v3934_v28 = vpop.eup %3635  ;;  %v684_v29 = vadd.f32 %v683_v18, %v682_v12  ;;  %v696_v30 = vadd.f32 %v695_v19, %v694_v17  ;;  %v715_v32 = vsel %vm679_vm5, %v3932_v21, 0.0  ;;  %v667_v34 = vmul.f32 1.442695, %v618_v25 }
 0x3a7   :  { %v692_v35 = vrot.slane %v691_v22, 1  ;;  %v704_v36 = vrot.slane %v703_v23, 2  ;;  %v716_v37 = vrot.slane %v715_v32, 4  ;;  %v708_v38 = vsel %vm679_vm5, %v3934_v28, 0.0 }
 0x3a8   :  { %v685_v39 = vrot.slane %v684_v29, 1  ;;  %v697_v40 = vrot.slane %v696_v30, 2  ;;  %v709_v41 = vrot.slane %v708_v38, 4  ;;  %3645 = vpow2.f32 %v669_v24  ;;  %v3308_v42 = vpop.f32.mrb[14].mxu1 }
 0x3a9   :  { %v3940_v44 = vpop.eup %3637  ;;  %v693_v45 = vadd.f32 %v692_v35, %v691_v22  ;;  %v705_v47 = vadd.f32 %v704_v36, %v703_v23  ;;  %v717_v49 = vadd.f32 %v716_v37, %v715_v32  ;;  %3647 = vpow2.f32 %v667_v34  ;;  %v628_v50 = vpop.f32.mrb[15].mxu1 }
 0x3aa   :  { %v3942_v51 = vpop.eup %3639  ;;  %v686_v52 = vadd.f32 %v685_v39, %v684_v29  ;;  %v698_v53 = vadd.f32 %v697_v40, %v696_v30  ;;  %v710_v54 = vadd.f32 %v709_v41, %v708_v38  ;;  %v729_v55 = vsel %vm679_vm5, %v3940_v44, 0.0 }
 0x3ab   :  { %3649 = vrcp.f32 %v693_v45  ;;  %v706_v56 = vrot.slane %v705_v47, 1  ;;  %v718_v57 = vrot.slane %v717_v49, 2  ;;  %v730_v58 = vrot.slane %v729_v55, 4 }
 0x3ac   :  { %3651 = vrcp.f32 %v686_v52  ;;  %v699_v59 = vrot.slane %v698_v53, 1  ;;  %v711_v60 = vrot.slane %v710_v54, 2  ;;  %v722_v62 = vsel %vm679_vm5, %v3942_v51, 0.0  ;;  %v3311_v63 = vpop.f32.mrb[16].mxu1 }
 0x3ad   :  { %v3948_v1 = vpop.eup %3641  ;;  %v707_v2 = vadd.f32 %v706_v56, %v705_v47  ;;  %v719_v3 = vadd.f32 %v718_v57, %v717_v49  ;;  %v731_v4 = vadd.f32 %v730_v58, %v729_v55  ;;  %v723_v5 = vrot.slane %v722_v62, 4  ;;  %v638_v6 = vpop.f32.mrb[17].mxu1 }
 0x3ae   :  { %v3950_v8 = vpop.eup %3643  ;;  %v700_v9 = vadd.f32 %v699_v59, %v698_v53  ;;  %v712_v10 = vadd.f32 %v711_v60, %v710_v54  ;;  %v743_v12 = vsel %vm679_vm5, %v3948_v1, 0.0  ;;  %v673_v13 = vmul.f32 1.442695, %v3308_v42 }
 0x3af   :  { %3653 = vrcp.f32 %v707_v2  ;;  %v720_v14 = vrot.slane %v719_v3, 1  ;;  %v732_v15 = vrot.slane %v731_v4, 2  ;;  %v724_v16 = vadd.f32 %v723_v5, %v722_v62 }
 0x3b0   :  { %3655 = vrcp.f32 %v700_v9  ;;  %v713_v17 = vrot.slane %v712_v10, 1  ;;  %v744_v18 = vrot.slane %v743_v12, 4  ;;  %v736_v19 = vsel %vm679_vm5, %v3950_v8, 0.0 }
 0x3b1   :  { %v721_v20 = vadd.f32 %v720_v14, %v719_v3  ;;  %v733_v22 = vadd.f32 %v732_v15, %v731_v4  ;;  %v725_v23 = vrot.slane %v724_v16, 2  ;;  %v737_v24 = vrot.slane %v736_v19, 4 }
 0x3b2   :  { %v3956_v25 = vpop.eup %3645  ;;  %v714_v29 = vadd.f32 %v713_v17, %v712_v10  ;;  %v745_v30 = vadd.f32 %v744_v18, %v743_v12  ;;  %3657 = vpow2.f32 %v673_v13  ;;  %v671_v32 = vmul.f32 1.442695, %v628_v50 }
 0x3b3   :  { %v3958_v34 = vpop.eup %3647  ;;  %3659 = vrcp.f32 %v721_v20  ;;  %v734_v35 = vrot.slane %v733_v22, 1  ;;  %v726_v36 = vadd.f32 %v725_v23, %v724_v16  ;;  %v738_v37 = vadd.f32 %v737_v24, %v736_v19 }
 0x3b4   :  { %3661 = vrcp.f32 %v714_v29  ;;  %v746_v38 = vrot.slane %v745_v30, 2  ;;  %v757_v39 = vsel %vm679_vm5, %v3956_v25, 0.0  ;;  %v750_v40 = vsel %vm679_vm5, %v3958_v34, 0.0 }
 0x3b5   :  { %v3650_v41 = vpop.eup %3649  ;;  %v735_v42 = vadd.f32 %v734_v35, %v733_v22  ;;  %v727_v45 = vrot.slane %v726_v36, 1  ;;  %v739_v47 = vrot.slane %v738_v37, 2  ;;  %v758_v49 = vrot.slane %v757_v39, 4 }
 0x3b6   :  { %v3652_v50 = vpop.eup %3651  ;;  %v747_v52 = vadd.f32 %v746_v38, %v745_v30  ;;  %v751_v53 = vrot.slane %v750_v40, 4  ;;  %3663 = vpow2.f32 %v671_v32  ;;  %v677_v54 = vmul.f32 1.442695, %v3311_v63 }
 0x3b7   :  { %3665 = vrcp.f32 %v735_v42  ;;  %v728_v55 = vadd.f32 %v727_v45, %v726_v36  ;;  %v740_v56 = vadd.f32 %v739_v47, %v738_v37  ;;  %v759_v57 = vadd.f32 %v758_v49, %v757_v39 }
 0x3b8   :  { %v748_v58 = vrot.slane %v747_v52, 1  ;;  %v752_v59 = vadd.f32 %v751_v53, %v750_v40  ;;  %3667 = vpow2.f32 %v677_v54  ;;  %v675_v60 = vmul.f32 1.442695, %v638_v6 }
 0x3b9   :  { %v3654_v62 = vpop.eup %3653  ;;  %3669 = vrcp.f32 %v728_v55  ;;  %v741_v2 = vrot.slane %v740_v56, 1  ;;  %v760_v3 = vrot.slane %v759_v57, 2  ;;  %v808_v4 = vmul.f32 %v3652_v50, %v3918_v0 }
 0x3ba   :  { %v3656_v5 = vpop.eup %3655  ;;  %v749_v9 = vadd.f32 %v748_v58, %v747_v52  ;;  %v753_v10 = vrot.slane %v752_v59, 2  ;;  %3671 = vpow2.f32 %v675_v60  ;;  %v809_v63 = vmul.f32 %v3650_v41, %v3916_v61 }
 0x3bb   :  { %v742_v12 = vadd.f32 %v741_v2, %v740_v56  ;;  %v761_v13 = vadd.f32 %v760_v3, %v759_v57  ;;  %3314 = vmatprep.mubr.msk.f32.mxu0 %vm679_vm5, %v808_v4  ;;  %v810_v14 = vmul.f32 %v3656_v5, %v3926_v11  ;;  %v811_v20 = vmul.f32 %v3654_v62, %v3924_v7 }
 0x3bc   :  { %v3968_v15 = vpop.eup %3657  ;;  %3673 = vrcp.f32 %v749_v9  ;;  %v754_v6 = vadd.f32 %v753_v10, %v752_v59  ;;  %3315 = vmatmul.mubr.msk.f32.vlgmr.msra.gmra.mrb[2].mxu0 %vm679_vm5, %v809_v63 }
 0x3bd   :  { %v3660_v16 = vpop.eup %3659  ;;  %3675 = vrcp.f32 %v742_v12  ;;  %v762_v0 = vrot.slane %v761_v13, 1  ;;  %v771_v17 = vsel %vm679_vm5, %v3968_v15, 0.0  ;;  %3317 = vmatprep.mubr.msk.f32.mxu0 %vm679_vm5, %v810_v14 }
 0x3be   :  { %v3662_v61 = vpop.eup %3661  ;;  %v755_v18 = vrot.slane %v754_v6, 1  ;;  %v772_v19 = vrot.slane %v771_v17, 4  ;;  %v813_v7 = vmul.f32 %v3660_v16, %v3932_v21 }
 0x3bf   :  { %v763_v11 = vadd.f32 %v762_v0, %v761_v13  ;;  %v812_v22 = vmul.f32 %v3662_v61, %v3934_v28 }
 0x3c0   :  { %v3664_v23 = vpop.eup %3663  ;;  %v756_v24 = vadd.f32 %v755_v18, %v754_v6  ;;  %v773_v29 = vadd.f32 %v772_v19, %v771_v17  ;;  %3318 = vmatmul.mubr.msk.f32.gmra.mrb[4].mxu0 %vm679_vm5, %v811_v20  ;;  %v142_v18 = vld [vmem:[#allocation2 + $0xa0] sm:$0xff]  ;;  %v143_v19 = vld [vmem:[#allocation2 + $0xa8] sm:$0xff] }
 0x3c1   :  { %v3666_v30 = vpop.eup %3665  ;;  %3677 = vrcp.f32 %v763_v11  ;;  %v764_v32 = vsel %vm679_vm5, %v3664_v23, 0.0  ;;  %3320 = vmatprep.mubr.msk.f32.mxu0 %vm679_vm5, %v812_v22  ;;  %v3528_v20 = vpack.c.bf16 %v143_v19, %v142_v18  ;;  %v144_v11 = vld [vmem:[#allocation2 + $0xb0] sm:$0xff]  ;;  %v145_v22 = vld [vmem:[#allocation2 + $0xb8] sm:$0xff] }
 0x3c2   :  { %v3668_v35 = vpop.eup %3667  ;;  %3679 = vrcp.f32 %v756_v24  ;;  %v774_v36 = vrot.slane %v773_v29, 2  ;;  %v765_v37 = vrot.slane %v764_v32, 4  ;;  %v815_v49 = vmul.f32 %v3666_v30, %v3940_v44 }
 0x3c3   :  { %v3670_v38 = vpop.eup %3669  ;;  %v785_v28 = vsel %vm679_vm5, %v3668_v35, 0.0  ;;  %3529 = vmatprep.subr.bf16.mxu1 %v3528_v20 }
 0x3c4   :  { %v3672_v39 = vpop.eup %3671  ;;  %v775_v40 = vadd.f32 %v774_v36, %v773_v29  ;;  %v766_v41 = vadd.f32 %v765_v37, %v764_v32  ;;  %v786_v42 = vrot.slane %v785_v28, 4  ;;  %3321 = vmatmul.mubr.msk.f32.gmra.mrb[6].mxu0 %vm679_vm5, %v813_v7  ;;  %v814_v45 = vmul.f32 %v3670_v38, %v3942_v51  ;;  %3531 = vmatpush3.bf16.msra.mxu1 %v3528_v20  ;;  %v4008_v20 = vpop.permute.xlu1 %1023 }
 0x3c5   :  { %v778_v47 = vsel %vm679_vm5, %v3672_v39, 0.0 }
 0x3c6   :  { %v3674_v50 = vpop.eup %3673  ;;  %v776_v52 = vrot.slane %v775_v40, 1  ;;  %v767_v53 = vrot.slane %v766_v41, 2  ;;  %v787_v54 = vadd.f32 %v786_v42, %v785_v28  ;;  %v779_v21 = vrot.slane %v778_v47, 4  ;;  %3323 = vmatprep.mubr.msk.f32.mxu0 %vm679_vm5, %v814_v45 }
 0x3c7   :  { %v3676_v55 = vpop.eup %3675  ;;  %v817_v44 = vmul.f32 %v3674_v50, %v3948_v1 }
 0x3c8   :  { %v768_v56 = vadd.f32 %v767_v53, %v766_v41  ;;  %v788_v57 = vrot.slane %v787_v54, 2  ;;  %v780_v58 = vadd.f32 %v779_v21, %v778_v47  ;;  %3324 = vmatmul.mubr.msk.f32.gmra.mrb[8].mxu0 %vm679_vm5, %v815_v49  ;;  %v777_v59 = vadd.f32 %v776_v52, %v775_v40 }
 0x3c9   :  { %v816_v51 = vmul.f32 %v3676_v55, %v3950_v8 }
 0x3ca   :  { %v769_v60 = vrot.slane %v768_v56, 1  ;;  %v789_v62 = vadd.f32 %v788_v57, %v787_v54  ;;  %v781_v2 = vrot.slane %v780_v58, 2  ;;  %3681 = vrcp.f32 %v777_v59 }
 0x3cb   :  { %v3678_v3 = vpop.eup %3677  ;;  %3326 = vmatprep.mubr.msk.f32.mxu0 %vm679_vm5, %v816_v51 }
 0x3cc   :  { %v3680_v4 = vpop.eup %3679  ;;  %v770_v5 = vadd.f32 %v769_v60, %v768_v56  ;;  %v790_v9 = vrot.slane %v789_v62, 1  ;;  %v782_v10 = vadd.f32 %v781_v2, %v780_v58  ;;  %3327 = vmatmul.mubr.msk.f32.gmra.mrb[10].mxu0 %vm679_vm5, %v817_v44  ;;  %v819_v13 = vmul.f32 %v3678_v3, %v3956_v25 }
 0x3cd   :  { %v818_v63 = vmul.f32 %v3680_v4, %v3958_v34 }
 0x3ce   :  { %3683 = vrcp.f32 %v770_v5  ;;  %v791_v12 = vadd.f32 %v790_v9, %v789_v62  ;;  %v783_v8 = vrot.slane %v782_v10, 1 }
 0x3cf   :  { %3329 = vmatprep.mubr.msk.f32.mxu0 %vm679_vm5, %v818_v63 }
 0x3d0   :  { %v784_v1 = vadd.f32 %v783_v8, %v782_v10  ;;  %3330 = vmatmul.mubr.msk.f32.gmra.mrb[12].mxu0 %vm679_vm5, %v819_v13  ;;  %3685 = vrcp.f32 %v791_v12 }
 0x3d2   :  { %3687 = vrcp.f32 %v784_v1 }
 0x3d4   :  { %v3682_v14 = vpop.eup %3681 }
 0x3d5   :  { %v821_v0 = vmul.f32 %v3682_v14, %v3968_v15  ;;  %v3532_v15 = vpack.c.bf16 %v145_v22, %v144_v11 }
 0x3d7   :  { %3533 = vmatprep.subr.bf16.mxu1 %v3532_v15 }
 0x3d8   :  { %v3684_v6 = vpop.eup %3683  ;;  %3535 = vmatpush3.bf16.msra.mxu1 %v3532_v15 }
 0x3d9   :  { %v820_v16 = vmul.f32 %v3684_v6, %v3664_v23  ;;  %v1022_v23 = vpop.permute.xlu0 %1021 }
 0x3da   :  { %v3686_v17 = vpop.eup %3685 }
 0x3db   :  { %3332 = vmatprep.mubr.msk.f32.mxu0 %vm679_vm5, %v820_v16  ;;  %v823_v25 = vmul.f32 %v3686_v17, %v3668_v35 }
 0x3dc   :  { %v3688_v34 = vpop.eup %3687  ;;  %3333 = vmatmul.mubr.msk.f32.gmra.mrb[14].mxu0 %vm679_vm5, %v821_v0 }
 0x3dd   :  { %v822_v61 = vmul.f32 %v3688_v34, %v3672_v39 }
 0x3df   :  { %3335 = vmatprep.mubr.msk.f32.mxu0 %vm679_vm5, %v822_v61 }
 0x3e0   :  { %3336 = vmatmul.mubr.msk.f32.gmra.mrb[16].mxu0 %vm679_vm5, %v823_v25 }
 0x48f   :  { %v3316_v24 = vpop.f32.mrb[2].mxu0 }
 0x490   :  { %v1028_v29 = vmul.f32 %v3316_v24, %v1022_v23  ;;  %v942_v30 = vpop.f32.mrb[3].mxu0 }
 0x491   :  { %v1027_v32 = vmul.f32 %v1022_v23, %v942_v30 }
 0x492   :  { %v1050_v35 = vsel %vm170_vm3, %v1028_v29, 0.0 }
 0x493   :  { %v1051_v36 = vrot.slane %v1050_v35, 4  ;;  %v1043_v37 = vsel %vm170_vm3, %v1027_v32, 0.0  ;;  %v3319_v7 = vpop.f32.mrb[4].mxu0 }
 0x494   :  { %v1044_v38 = vrot.slane %v1043_v37, 4  ;;  %v1030_v28 = vmul.f32 %v3319_v7, %v1022_v23  ;;  %v952_v39 = vpop.f32.mrb[5].mxu0 }
 0x495   :  { %v1052_v40 = vadd.f32 %v1051_v36, %v1050_v35  ;;  %v1029_v41 = vmul.f32 %v1022_v23, %v952_v39 }
 0x496   :  { %v1045_v42 = vadd.f32 %v1044_v38, %v1043_v37  ;;  %v1064_v45 = vsel %vm170_vm3, %v1030_v28, 0.0 }
 0x497   :  { %v1053_v47 = vrot.slane %v1052_v40, 2  ;;  %v1065_v49 = vrot.slane %v1064_v45, 4  ;;  %v1057_v50 = vsel %vm170_vm3, %v1029_v41, 0.0  ;;  %v3322_v52 = vpop.f32.mrb[6].mxu0 }
 0x498   :  { %v1046_v53 = vrot.slane %v1045_v42, 2  ;;  %v1058_v54 = vrot.slane %v1057_v50, 4  ;;  %v1032_v21 = vmul.f32 %v3322_v52, %v1022_v23  ;;  %v962_v55 = vpop.f32.mrb[7].mxu0 }
 0x499   :  { %v1054_v56 = vadd.f32 %v1053_v47, %v1052_v40  ;;  %v1066_v57 = vadd.f32 %v1065_v49, %v1064_v45  ;;  %v1031_v58 = vmul.f32 %v1022_v23, %v962_v55 }
 0x49a   :  { %v1047_v59 = vadd.f32 %v1046_v53, %v1045_v42  ;;  %v1059_v51 = vadd.f32 %v1058_v54, %v1057_v50  ;;  %v1078_v60 = vsel %vm170_vm3, %v1032_v21, 0.0 }
 0x49b   :  { %v1055_v62 = vrot.slane %v1054_v56, 1  ;;  %v1067_v2 = vrot.slane %v1066_v57, 2  ;;  %v1079_v44 = vrot.slane %v1078_v60, 4  ;;  %v1071_v3 = vsel %vm170_vm3, %v1031_v58, 0.0  ;;  %v3325_v4 = vpop.f32.mrb[8].mxu0 }
 0x49c   :  { %v1048_v5 = vrot.slane %v1047_v59, 1  ;;  %v1060_v9 = vrot.slane %v1059_v51, 2  ;;  %v1072_v10 = vrot.slane %v1071_v3, 4  ;;  %v1034_v63 = vmul.f32 %v3325_v4, %v1022_v23  ;;  %v972_v12 = vpop.f32.mrb[9].mxu0 }
 0x49d   :  { %v1056_v8 = vadd.f32 %v1055_v62, %v1054_v56  ;;  %v1068_v13 = vadd.f32 %v1067_v2, %v1066_v57  ;;  %v1080_v1 = vadd.f32 %v1079_v44, %v1078_v60  ;;  %v1033_v14 = vmul.f32 %v1022_v23, %v972_v12 }
 0x49e   :  { %v1049_v6 = vadd.f32 %v1048_v5, %v1047_v59  ;;  %v1061_v16 = vadd.f32 %v1060_v9, %v1059_v51  ;;  %v1073_v0 = vadd.f32 %v1072_v10, %v1071_v3  ;;  %v1092_v17 = vsel %vm170_vm3, %v1034_v63, 0.0 }
 0x49f   :  { %v1069_v34 = vrot.slane %v1068_v13, 1  ;;  %v1081_v61 = vrot.slane %v1080_v1, 2  ;;  %v1093_v25 = vrot.slane %v1092_v17, 4  ;;  %v1085_v18 = vsel %vm170_vm3, %v1033_v14, 0.0  ;;  %v3328_v19 = vpop.f32.mrb[10].mxu0 }
 0x4a0   :  { %v1176_v11 = vsel %vm1175_vm6, %v1056_v8, %v1049_v6  ;;  %v1062_v22 = vrot.slane %v1061_v16, 1  ;;  %v1074_v15 = vrot.slane %v1073_v0, 2  ;;  %v1086_v24 = vrot.slane %v1085_v18, 4  ;;  %v982_v23 = vpop.f32.mrb[11].mxu0 }
 0x4a1   :  { %v1082_v29 = vadd.f32 %v1081_v61, %v1080_v1  ;;  %v1094_v30 = vadd.f32 %v1093_v25, %v1092_v17  ;;  %v1036_v32 = vmul.f32 %v3328_v19, %v4008_v20  ;;  %v1035_v7 = vmul.f32 %v4008_v20, %v982_v23 }
 0x4a2   :  { %v1063_v35 = vadd.f32 %v1062_v22, %v1061_v16  ;;  %v1075_v36 = vadd.f32 %v1074_v15, %v1073_v0  ;;  %v1087_v37 = vadd.f32 %v1086_v24, %v1085_v18  ;;  %v1070_v38 = vadd.f32 %v1069_v34, %v1068_v13 }
 0x4a3   :  { %v1095_v28 = vrot.slane %v1094_v30, 2  ;;  %v1106_v39 = vsel %vm170_vm3, %v1036_v32, 0.0  ;;  %v3331_v40 = vpop.f32.mrb[12].mxu0  ;;  %v1083_v50 = vrot.slane %v1082_v29, 1  ;;  %v1099_v53 = vsel %vm170_vm3, %v1035_v7, 0.0 }
 0x4a4   :  { %v1178_v41 = vsel %vm1177_vm7, %v1063_v35, %v1176_v11  ;;  %v1076_v42 = vrot.slane %v1075_v36, 1  ;;  %v1088_v45 = vrot.slane %v1087_v37, 2  ;;  %v1107_v47 = vrot.slane %v1106_v39, 4  ;;  %v992_v49 = vpop.f32.mrb[13].mxu0 }
 0x4a5   :  { %v1096_v52 = vadd.f32 %v1095_v28, %v1094_v30  ;;  %v1038_v54 = vmul.f32 %v3331_v40, %v4008_v20  ;;  %v1100_v57 = vrot.slane %v1099_v53, 4  ;;  %v1037_v51 = vmul.f32 %v4008_v20, %v992_v49 }
 0x4a6   :  { %v1077_v21 = vadd.f32 %v1076_v42, %v1075_v36  ;;  %v1089_v55 = vadd.f32 %v1088_v45, %v1087_v37  ;;  %v1108_v56 = vadd.f32 %v1107_v47, %v1106_v39  ;;  %v1180_v60 = vsel %vm1179_vm8, %v1070_v38, %v1178_v41 }
 0x4a7   :  { %v1097_v58 = vrot.slane %v1096_v52, 1  ;;  %v1120_v59 = vsel %vm170_vm3, %v1038_v54, 0.0  ;;  %v1101_v44 = vadd.f32 %v1100_v57, %v1099_v53  ;;  %v1084_v4 = vadd.f32 %v1083_v50, %v1082_v29 }
 0x4a8   :  { %v1090_v62 = vrot.slane %v1089_v55, 1  ;;  %v1109_v2 = vrot.slane %v1108_v56, 2  ;;  %v1121_v3 = vrot.slane %v1120_v59, 4  ;;  %v1113_v5 = vsel %vm170_vm3, %v1037_v51, 0.0 }
 0x4a9   :  { %v1182_v9 = vsel %vm1181_vm9, %v1077_v21, %v1180_v60  ;;  %v1102_v12 = vrot.slane %v1101_v44, 2  ;;  %v1098_v13 = vadd.f32 %v1097_v58, %v1096_v52  ;;  %v1114_v1 = vrot.slane %v1113_v5, 4 }
 0x4aa   :  { %v1091_v10 = vadd.f32 %v1090_v62, %v1089_v55  ;;  %v1110_v63 = vadd.f32 %v1109_v2, %v1108_v56  ;;  %v1122_v8 = vadd.f32 %v1121_v3, %v1120_v59  ;;  %v1184_v14 = vsel %vm1183_vm10, %v1084_v4, %v1182_v9 }
 0x4ab   :  { %v1103_v16 = vadd.f32 %v1102_v12, %v1101_v44  ;;  %v1115_v34 = vadd.f32 %v1114_v1, %v1113_v5 }
 0x4ac   :  { %v1111_v6 = vrot.slane %v1110_v63, 1  ;;  %v1123_v0 = vrot.slane %v1122_v8, 2  ;;  %v1186_v17 = vsel %vm1185_vm11, %v1091_v10, %v1184_v14 }
 0x4ad   :  { %v1188_v61 = vsel %vm1187_vm12, %v1098_v13, %v1186_v17  ;;  %v1104_v18 = vrot.slane %v1103_v16, 1  ;;  %v1116_v11 = vrot.slane %v1115_v34, 2 }
 0x4ae   :  { %v1112_v25 = vadd.f32 %v1111_v6, %v1110_v63  ;;  %v1124_v19 = vadd.f32 %v1123_v0, %v1122_v8  ;;  %3346 = vmatprep.mubr.msk.f32.mxu1 %vm170_vm3, %v1188_v61  ;;  %v3042_v0 = vld [vmem:[%s4318_s2 + $0x9] ss:$0 sm:$0xff] }
 0x4af   :  { %v3334_v22 = vpop.f32.mrb[14].mxu0  ;;  %v1105_v15 = vadd.f32 %v1104_v18, %v1103_v16  ;;  %v1117_v29 = vadd.f32 %v1116_v11, %v1115_v34 }
 0x4b0   :  { %v1040_v24 = vmul.f32 %v3334_v22, %v4008_v20  ;;  %v1002_v23 = vpop.f32.mrb[15].mxu0  ;;  %v1125_v35 = vrot.slane %v1124_v19, 1 }
 0x4b1   :  { %v1039_v30 = vmul.f32 %v4008_v20, %v1002_v23  ;;  %v1189_v32 = vsel %vm1175_vm6, %v1112_v25, %v1105_v15  ;;  %v1118_v37 = vrot.slane %v1117_v29, 1  ;;  %v146_v15 = vld [vmem:[#allocation2 + $0xc0] sm:$0xff] }
 0x4b2   :  { %v1134_v36 = vsel %vm170_vm3, %v1040_v24, 0.0  ;;  %v1126_v49 = vadd.f32 %v1125_v35, %v1124_v19  ;;  %v147_v24 = vld [vmem:[#allocation2 + $0xc8] sm:$0xff] }
 0x4b3   :  { %v1135_v7 = vrot.slane %v1134_v36, 4  ;;  %v1127_v38 = vsel %vm170_vm3, %v1039_v30, 0.0  ;;  %v3337_v28 = vpop.f32.mrb[16].mxu0  ;;  %v1119_v42 = vadd.f32 %v1118_v37, %v1117_v29  ;;  %v3536_v23 = vpack.c.bf16 %v147_v24, %v146_v15 }
 0x4b4   :  { %v1128_v39 = vrot.slane %v1127_v38, 4  ;;  %v1042_v40 = vmul.f32 %v3337_v28, %v4008_v20  ;;  %v1012_v41 = vpop.f32.mrb[17].mxu0  ;;  %v148_v28 = vld [vmem:[#allocation2 + $0xd0] sm:$0xff] }
 0x4b5   :  { %v1136_v45 = vadd.f32 %v1135_v7, %v1134_v36  ;;  %v1041_v47 = vmul.f32 %v4008_v20, %v1012_v41  ;;  %v1190_v53 = vsel %vm1177_vm7, %v1119_v42, %v1189_v32  ;;  %3537 = vmatprep.subr.bf16.mxu0 %v3536_v23  ;;  %v150_v41 = vld [vmem:[#allocation2 + $0xe0] sm:$0xff]  ;;  %v151_v42 = vld [vmem:[#allocation2 + $0xe8] sm:$0xff] }
 0x4b6   :  { %v1129_v50 = vadd.f32 %v1128_v39, %v1127_v38  ;;  %v1148_v52 = vsel %vm170_vm3, %v1042_v40, 0.0  ;;  %v1191_v57 = vsel %vm1179_vm8, %v1126_v49, %v1190_v53  ;;  %3539 = vmatpush3.bf16.msra.mxu0 %v3536_v23  ;;  %v149_v39 = vld [vmem:[#allocation2 + $0xd8] sm:$0xff]  ;;  %v155_v53 = vld [vmem:[#allocation2 + $0x108] sm:$0xff] }
 0x4b7   :  { %v1137_v54 = vrot.slane %v1136_v45, 2  ;;  %v1149_v21 = vrot.slane %v1148_v52, 4  ;;  %v1141_v55 = vsel %vm170_vm3, %v1041_v47, 0.0  ;;  %v3540_v40 = vpack.c.bf16 %v149_v39, %v148_v28  ;;  %v153_v49 = vld [vmem:[#allocation2 + $0xf8] sm:$0xff]  ;;  %v1531_v28 = vld [vmem:[#allocation2 + $0x130] sm:$0xff] }
 0x4b8   :  { %v1130_v56 = vrot.slane %v1129_v50, 2  ;;  %v1142_v58 = vrot.slane %v1141_v55, 4  ;;  %v3544_v47 = vpack.c.bf16 %v151_v42, %v150_v41  ;;  %v1532_v39 = vld [vmem:[#allocation2 + $0x138] sm:$0xff] }
 0x4b9   :  { %v1138_v59 = vadd.f32 %v1137_v54, %v1136_v45  ;;  %v1150_v51 = vadd.f32 %v1149_v21, %v1148_v52  ;;  %3541 = vmatprep.subr.bf16.mxu0 %v3540_v40  ;;  %v152_v45 = vld [vmem:[#allocation2 + $0xf0] sm:$0xff]  ;;  %v154_v52 = vld [vmem:[#allocation2 + $0x100] sm:$0xff] }
 0x4ba   :  { %v1131_v60 = vadd.f32 %v1130_v56, %v1129_v50  ;;  %v1143_v62 = vadd.f32 %v1142_v58, %v1141_v55  ;;  %3543 = vmatpush3.bf16.msra.mxu0 %v3540_v40  ;;  %v3548_v50 = vpack.c.bf16 %v153_v49, %v152_v45  ;;  %3545 = vmatprep.subr.bf16.mxu1 %v3544_v47 }
 0x4bb   :  { %v1139_v2 = vrot.slane %v1138_v59, 1  ;;  %v1151_v20 = vrot.slane %v1150_v51, 2  ;;  %v3552_v54 = vpack.c.bf16 %v155_v53, %v154_v52  ;;  %v3564_v40 = vpack.c.bf16 %v1532_v39, %v1531_v28  ;;  %v3053_v53 = vld [vmem:[%s4318_s2 + $0xe] ss:$0 sm:$0xff] }
 0x4bc   :  { %v1132_v44 = vrot.slane %v1131_v60, 1  ;;  %v1144_v3 = vrot.slane %v1143_v62, 2 }
 0x4bd   :  { %v1152_v4 = vadd.f32 %v1151_v20, %v1150_v51  ;;  %v1140_v10 = vadd.f32 %v1139_v2, %v1138_v59  ;;  %v3046_v2 = vld [vmem:[%s4318_s2 + $0xb] ss:$0 sm:$0xff] }
 0x4be   :  { %v1133_v5 = vadd.f32 %v1132_v44, %v1131_v60  ;;  %v1145_v9 = vadd.f32 %v1144_v3, %v1143_v62  ;;  %v3045_v60 = vld [vmem:[%s4318_s2 + $0xa] ss:$0 sm:$0xff] }
 0x4bf   :  { %v1153_v63 = vrot.slane %v1152_v4, 1 }
 0x4c0   :  { %v1192_v12 = vsel %vm1181_vm9, %v1133_v5, %v1191_v57  ;;  %v1146_v8 = vrot.slane %v1145_v9, 1 }
 0x4c1   :  { %v1193_v13 = vsel %vm1183_vm10, %v1140_v10, %v1192_v12  ;;  %v1154_v14 = vadd.f32 %v1153_v63, %v1152_v4  ;;  %v156_v10 = vld [vmem:[#allocation2 + $0x110] sm:$0xff]  ;;  %v157_v63 = vld [vmem:[#allocation2 + $0x118] sm:$0xff] }
 0x4c2   :  { %v1147_v1 = vadd.f32 %v1146_v8, %v1145_v9  ;;  %v3556_v12 = vpack.c.bf16 %v157_v63, %v156_v10  ;;  %v3047_v8 = vld [vmem:[%s4318_s2 + $0xc] ss:$0 sm:$0xff] }
 0x4c4   :  { %v1194_v6 = vsel %vm1185_vm11, %v1147_v1, %v1193_v13 }
 0x4c5   :  { %v1195_v16 = vsel %vm1187_vm12, %v1154_v14, %v1194_v6 }
 0x4c6   :  { %3347 = vmatmul.mubr.msk.f32.vlgmr.msra.gmra.mrb[18].mxu1 %vm170_vm3, %v1195_v16 }
 0x4c7   :  { %3547 = vmatpush3.bf16.msra.mxu1 %v3544_v47 }
 0x4c8   :  { %3549 = vmatprep.subr.bf16.mxu1 %v3548_v50 }
 0x4cb   :  { %3551 = vmatpush3.bf16.msra.mxu1 %v3548_v50 }
 0x4cc   :  { %3553 = vmatprep.subr.bf16.mxu1 %v3552_v54 }
 0x4cf   :  { %3555 = vmatpush3.bf16.msra.mxu1 %v3552_v54 }
 0x4d0   :  { %3557 = vmatprep.subr.bf16.mxu1 %v3556_v12 }
 0x4d3   :  { %3559 = vmatpush3.bf16.msra.mxu1 %v3556_v12 }
 0x4d4   :  { %3422 = vmatprep.subr.msk.mxu1 %vm872_vm4, %v3910_v46 }
 0x599   :  { %v3348_v17 = vpop.f32.mrb[18].mxu1 }
 0x59a   :  { %v1272_v34 = vadd.f32 %v3348_v17, %v3042_v0  ;;  %v1266_v61 = vpop.f32.mrb[19].mxu1  ;;  %v3050_v17 = vld [vmem:[%s4318_s2 + $0xd] ss:$0 sm:$0xff] }
 0x59b   :  { %v1267_v25 = vadd.f32 %v3042_v0, %v1266_v61 }
 0x59c   :  { %v1276_v18 = vadd.f32 %v3839_v26, %v1272_v34 }
 0x59d   :  { %v1275_v19 = vadd.f32 %v1267_v25, %v3841_v27 }
 0x59e   :  { %v1280_v11 = vsel %vm170_vm3, %v1276_v18, 0.0 }
 0x59f   :  { %1281 = vadd.xlane.f32.xlu1 %v1280_v11  ;;  %v1277_v22 = vsel %vm170_vm3, %v1275_v19, 0.0 }
 0x5a0   :  { %1278 = vadd.xlane.f32.xlu0 %v1277_v22 }
 0x62c   :  { %v1282_v29 = vpop.xlane.xlu1 %1281 }
 0x62d   :  { %v1285_v30 = vmul.f32 0.03125, %v1282_v29  ;;  %v1279_v32 = vpop.xlane.xlu0 %1278 }
 0x62e   :  { %v1284_v35 = vmul.f32 0.03125, %v1279_v32 }
 0x62f   :  { %v1287_v36 = vsub.f32 %v1276_v18, %v1285_v30 }
 0x630   :  { %v1286_v37 = vsub.f32 %v1275_v19, %v1284_v35 }
 0x631   :  { %v1289_v7 = vmul.f32 %v1287_v36, %v1287_v36 }
 0x632   :  { %v1288_v26 = vmul.f32 %v1286_v37, %v1286_v37 }
 0x633   :  { %v1293_v38 = vsel %vm170_vm3, %v1289_v7, 0.0  ;;  %v1530_v7 = vld [vmem:[#allocation2 + $0x128] sm:$0xff] }
 0x634   :  { %v1290_v27 = vsel %vm170_vm3, %v1288_v26, 0.0 }
 0x635   :  { %1291 = vadd.xlane.f32.xlu0 %v1290_v27  ;;  %v1529_v27 = vld [vmem:[#allocation2 + $0x120] sm:$0xff] }
 0x639   :  { %1294 = vadd.xlane.f32.xlu0 %v1293_v38  ;;  %v3560_v38 = vpack.c.bf16 %v1530_v7, %v1529_v27 }
 0x63b   :  { %3561 = vmatprep.subr.bf16.mxu0 %v3560_v38 }
 0x6c2   :  { %v1292_v21 = vpop.xlane.xlu0 %1291 }
 0x6c3   :  { %v1296_v55 = vmul.f32 0.03125, %v1292_v21 }
 0x6c5   :  { %v1298_v56 = vadd.f32 1e-05, %v1296_v55 }
 0x6c6   :  { %v1295_v57 = vpop.xlane.xlu0 %1294 }
 0x6c7   :  { %3689 = vrsqrt.f32 %v1298_v56  ;;  %v1297_v58 = vmul.f32 0.03125, %v1295_v57  ;;  %v3054_v56 = vld [vmem:[%s4318_s2 + $0xf] ss:$0 sm:$0xff] }
 0x6c9   :  { %v1299_v59 = vadd.f32 1e-05, %v1297_v58 }
 0x6cb   :  { %3691 = vrsqrt.f32 %v1299_v59 }
 0x6d1   :  { %v3690_v51 = vpop.eup %3689 }
 0x6d2   :  { %v1302_v62 = vmul.f32 %v3690_v51, %v1286_v37 }
 0x6d4   :  { %v1308_v20 = vmul.f32 %v3045_v60, %v1302_v62 }
 0x6d5   :  { %v3692_v44 = vpop.eup %3691 }
 0x6d6   :  { %v1303_v3 = vmul.f32 %v3692_v44, %v1287_v36  ;;  %v1314_v4 = vadd.f32 %v3046_v2, %v1308_v20 }
 0x6d8   :  { %v1309_v5 = vmul.f32 %v3045_v60, %v1303_v3  ;;  %3357 = vmatprep.mubr.msk.f32.mxu0 %vm170_vm3, %v1314_v4  ;;  %v3055_v60 = vld [vmem:[%s4318_s2 + $0x10] ss:$0 sm:$0xff] }
 0x6da   :  { %v1315_v9 = vadd.f32 %v3046_v2, %v1309_v5 }
 0x6dc   :  { %3358 = vmatmul.mubr.msk.f32.vlgmr.msra.gmra.mrb[18].mxu0 %vm170_vm3, %v1315_v9 }
 0x6dd   :  { %3563 = vmatpush3.bf16.msra.mxu0 %v3560_v38 }
 0x6de   :  { %3565 = vmatprep.subr.bf16.mxu0 %v3564_v40 }
 0x6e1   :  { %3567 = vmatpush3.bf16.msra.mxu0 %v3564_v40 }
 0x6e2   :  { %3569 = vmatprep.subr.bf16.mxu0 %v3847_v31 }
 0x7af   :  { %v3359_v13 = vpop.f32.mrb[18].mxu0 }
 0x7b0   :  { %v1398_v1 = vadd.f32 %v3359_v13, %v3047_v8  ;;  %v1392_v14 = vpop.f32.mrb[19].mxu0 }
 0x7b1   :  { %v1393_v6 = vadd.f32 %v3047_v8, %v1392_v14 }
 0x7b2   :  { %v1402_v0 = vmax.f32 %v1398_v1, 0.0 }
 0x7b3   :  { %v1401_v16 = vmax.f32 %v1393_v6, 0.0 }
 0x7b5   :  { %3376 = vmatprep.mubr.msk.f32.mxu1 %vm1407_vm13, %v1401_v16 }
 0x7b6   :  { %3377 = vmatmul.mubr.msk.f32.vlgmr.msra.gmra.mrb[20].mxu1 %vm1407_vm13, %v1402_v0 }
 0x7b7   :  { %3423 = vmatpush3.msk.msra.mxu1 %vm872_vm4, %v3910_v46 }
 0x889   :  { %v3378_v34 = vpop.f32.mrb[20].mxu1 }
 0x88a   :  { %v1486_v61 = vadd.f32 %v3378_v34, %v3050_v17  ;;  %v1480_v25 = vpop.f32.mrb[21].mxu1 }
 0x88b   :  { %v1481_v18 = vadd.f32 %v3050_v17, %v1480_v25 }
 0x88c   :  { %v1490_v19 = vadd.f32 %v1486_v61, %v1315_v9 }
 0x88d   :  { %v1489_v11 = vadd.f32 %v1481_v18, %v1314_v4 }
 0x88e   :  { %v1494_v22 = vsel %vm170_vm3, %v1490_v19, 0.0 }
 0x88f   :  { %1495 = vadd.xlane.f32.xlu0 %v1494_v22  ;;  %v1491_v15 = vsel %vm170_vm3, %v1489_v11, 0.0 }
 0x890   :  { %1492 = vadd.xlane.f32.xlu1 %v1491_v15 }
 0x91c   :  { %v1496_v24 = vpop.xlane.xlu0 %1495 }
 0x91d   :  { %v1498_v23 = vmul.f32 0.03125, %v1496_v24  ;;  %v1493_v29 = vpop.xlane.xlu1 %1492 }
 0x91e   :  { %v1497_v46 = vmul.f32 0.03125, %v1493_v29 }
 0x91f   :  { %v1500_v30 = vsub.f32 %v1490_v19, %v1498_v23 }
 0x920   :  { %v1499_v32 = vsub.f32 %v1489_v11, %v1497_v46 }
 0x921   :  { %v1502_v35 = vmul.f32 %v1500_v30, %v1500_v30 }
 0x922   :  { %v1501_v36 = vmul.f32 %v1499_v32, %v1499_v32 }
 0x923   :  { %v1506_v37 = vsel %vm170_vm3, %v1502_v35, 0.0 }
 0x924   :  { %1507 = vadd.xlane.f32.xlu0 %v1506_v37  ;;  %v1503_v26 = vsel %vm170_vm3, %v1501_v36, 0.0 }
 0x925   :  { %1504 = vadd.xlane.f32.xlu1 %v1503_v26 }
 0x9b1   :  { %v1508_v41 = vpop.xlane.xlu0 %1507 }
 0x9b2   :  { %v1510_v42 = vmul.f32 0.03125, %v1508_v41  ;;  %v1505_v45 = vpop.xlane.xlu1 %1504 }
 0x9b3   :  { %v1509_v47 = vmul.f32 0.03125, %v1505_v45 }
 0x9b4   :  { %v1512_v49 = vadd.f32 1e-05, %v1510_v42 }
 0x9b5   :  { %v1511_v50 = vadd.f32 1e-05, %v1509_v47 }
 0x9b6   :  { %3693 = vrsqrt.f32 %v1512_v49 }
 0x9b7   :  { %3695 = vrsqrt.f32 %v1511_v50 }
 0x9c0   :  { %v3694_v52 = vpop.eup %3693 }
 0x9c1   :  { %v3696_v54 = vpop.eup %3695  ;;  %v1516_v21 = vmul.f32 %v3694_v52, %v1500_v30 }
 0x9c2   :  { %v1515_v55 = vmul.f32 %v3696_v54, %v1499_v32 }
 0x9c3   :  { %v1522_v57 = vmul.f32 %v3053_v53, %v1516_v21 }
 0x9c4   :  { %v1521_v58 = vmul.f32 %v3053_v53, %v1515_v55 }
 0x9c5   :  { %v4084_v51 = vadd.f32 %v3054_v56, %v1522_v57 }
 0x9c6   :  { %v4082_v59 = vadd.f32 %v3054_v56, %v1521_v58 }
 0x9c8   :  { %3387 = vmatprep.mubr.msk.f32.mxu0 %vm170_vm3, %v4082_v59 }
 0x9c9   :  { %3388 = vmatmul.mubr.msk.f32.vlgmr.msra.gmra.mrb[20].mxu0 %vm170_vm3, %v4084_v51 }
 0x9ca   :  { %3571 = vmatpush3.bf16.msra.mxu0 %v3847_v31 }
 0x9cb   :  { %3573 = vmatprep.subr.bf16.mxu0 %v3849_v33 }
 0x9ce   :  { %3575 = vmatpush3.bf16.msra.mxu0 %v3849_v33 }
 0xa9c   :  { %v3389_v62 = vpop.f32.mrb[20].mxu0 }
 0xa9d   :  { %v1639_v2 = vadd.f32 %v3389_v62, %v3055_v60  ;;  %v1633_v20 = vpop.f32.mrb[21].mxu0 }
 0xa9e   :  { %v1634_v44 = vadd.f32 %v3055_v60, %v1633_v20 }
 0xa9f   :  { %1824 = vrot.lane.b32.xlu0 %v1639_v2, %s3799_s4  ;;  %v1700_v34 = vrot.slane %v1639_v2, %v3862_v43  ;;  %v1693_v15 = vcombine.high %v1639_v2, %v1639_v2 }
 0xaa0   :  { %1822 = vrot.lane.b32.xlu1 %v1634_v44, %s3799_s4  ;;  %v1651_v31 = vrot.slane %v1634_v44, %v3862_v43  ;;  %v1644_v33 = vcombine.high %v1634_v44, %v1634_v44 }
 0xaa1   :  { %v1708_v24 = vcombine.high %v1700_v34, %v1700_v34  ;;  %v1716_v46 = vrot.slane %v1700_v34, %v3862_v43  ;;  %v1707_v36 = vrot.slane %v1693_v15, %v3862_v43 }
 0xaa2   :  { %v1659_v3 = vcombine.high %v1651_v31, %v1651_v31  ;;  %v1667_v4 = vrot.slane %v1651_v31, %v3862_v43  ;;  %v1658_v9 = vrot.slane %v1644_v33, %v3862_v43 }
 0xaa3   :  { %v1730_v27 = vrot.slane %v1708_v24, %v3862_v43  ;;  %v1777_v7 = vrot.slane %v1716_v46, %v3866_v48  ;;  %v1738_v38 = vcombine.high %v1716_v46, %v1716_v46  ;;  %v1709_v40 = vcombine.high %v1707_v36, %v1707_v36 }
 0xaa4   :  { %2406 = vrot.lane.b32.xlu1 %v1634_v44, %s3798_s30  ;;  %v1681_v5 = vrot.slane %v1659_v3, %v3862_v43  ;;  %v1689_v10 = vcombine.high %v1667_v4, %v1667_v4  ;;  %v1745_v63 = vrot.slane %v1667_v4, %v3866_v48  ;;  %v1660_v8 = vcombine.high %v1658_v9, %v1658_v9 }
 0xaa5   :  { %v1674_v0 = vrot.slane %v1658_v9, %v3862_v43  ;;  %v1781_v41 = vrot.slane %v1730_v27, %v3866_v48  ;;  %v1740_v42 = vcombine.high %v1730_v27, %v1730_v27  ;;  %v1785_v45 = vrot.slane %v1738_v38, %v3866_v48 }
 0xaa6   :  { %v1749_v12 = vrot.slane %v1681_v5, %v3866_v48  ;;  %v1691_v1 = vcombine.high %v1681_v5, %v1681_v5  ;;  %v1753_v16 = vrot.slane %v1689_v10, %v3866_v48  ;;  %v1688_v25 = vrot.slane %v1660_v8, %v3862_v43 }
 0xaa7   :  { %v1761_v18 = vrot.slane %v1674_v0, %v3866_v48  ;;  %v1690_v19 = vcombine.high %v1674_v0, %v1674_v0  ;;  %v1723_v47 = vrot.slane %v1707_v36, %v3862_v43  ;;  %v1789_v52 = vrot.slane %v1740_v42, %v3866_v48 }
 0xaa8   :  { %2408 = vrot.lane.b32.xlu1 %v1639_v2, %s3798_s30  ;;  %v1757_v61 = vrot.slane %v1691_v1, %v3866_v48  ;;  %v1765_v23 = vrot.slane %v1688_v25, %v3866_v48  ;;  %v1692_v29 = vcombine.high %v1688_v25, %v1688_v25  ;;  %v1737_v53 = vrot.slane %v1709_v40, %v3862_v43 }
 0xaa9   :  { %v1769_v30 = vrot.slane %v1690_v19, %v3866_v48  ;;  %v1793_v54 = vrot.slane %v1723_v47, %v3866_v48  ;;  %v1739_v21 = vcombine.high %v1723_v47, %v1723_v47 }
 0xaaa   :  { %v1773_v26 = vrot.slane %v1692_v29, %v3866_v48  ;;  %v1797_v57 = vrot.slane %v1737_v53, %v3866_v48  ;;  %v1741_v58 = vcombine.high %v1737_v53, %v1737_v53 }
 0xaab   :  { %v1801_v60 = vrot.slane %v1739_v21, %v3866_v48 }
 0xaac   :  { %v1805_v43 = vrot.slane %v1741_v58, %v3866_v48 }
 0xb11   :  { %v1825_v37 = vpop.permute.xlu0 %1824 }
 0xb12   :  { %v1823_v13 = vpop.permute.xlu1 %1822  ;;  %v1836_v39 = vmul.f32 %v1825_v37, %v1777_v7  ;;  %v1837_v49 = vmul.f32 %v1825_v37, %v1781_v41  ;;  %v1838_v50 = vmul.f32 %v1825_v37, %v1785_v45  ;;  %v1839_v55 = vmul.f32 %v1825_v37, %v1789_v52 }
 0xb13   :  { %v1828_v14 = vmul.f32 %v1823_v13, %v1745_v63  ;;  %v1829_v6 = vmul.f32 %v1823_v13, %v1749_v12  ;;  %v1830_v17 = vmul.f32 %v1823_v13, %v1753_v16  ;;  %v1831_v11 = vmul.f32 %v1823_v13, %v1757_v61 }
 0xb14   :  { %v1832_v22 = vmul.f32 %v1823_v13, %v1761_v18  ;;  %v1833_v32 = vmul.f32 %v1823_v13, %v1765_v23  ;;  %v1834_v35 = vmul.f32 %v1823_v13, %v1769_v30  ;;  %v1835_v28 = vmul.f32 %v1823_v13, %v1773_v26 }
 0xb15   :  { %3398 = vmatprep.mubr.msk.f32.mxu0 %vm170_vm3, %v1828_v14  ;;  %v1840_v56 = vmul.f32 %v1825_v37, %v1793_v54  ;;  %v1841_v62 = vmul.f32 %v1825_v37, %v1797_v57  ;;  %v1842_v2 = vmul.f32 %v1825_v37, %v1801_v60  ;;  %v1843_v20 = vmul.f32 %v1825_v37, %v1805_v43 }
 0xb16   :  { %3399 = vmatmul.mubr.msk.f32.vlgmr.msra.gmra.mrb[22].mxu0 %vm170_vm3, %v1829_v6 }
 0xb17   :  { %3401 = vmatprep.mubr.msk.f32.mxu0 %vm170_vm3, %v1830_v17 }
 0xb1a   :  { %3402 = vmatmul.mubr.msk.f32.gmra.mrb[24].mxu0 %vm170_vm3, %v1831_v11 }
 0xb1b   :  { %3404 = vmatprep.mubr.msk.f32.mxu0 %vm170_vm3, %v1832_v22 }
 0xb1e   :  { %3405 = vmatmul.mubr.msk.f32.gmra.mrb[26].mxu0 %vm170_vm3, %v1833_v32 }
 0xb1f   :  { %3407 = vmatprep.mubr.msk.f32.mxu0 %vm170_vm3, %v1834_v35 }
 0xb22   :  { %3408 = vmatmul.mubr.msk.f32.gmra.mrb[28].mxu0 %vm170_vm3, %v1835_v28 }
 0xb23   :  { %3410 = vmatprep.mubr.msk.f32.mxu0 %vm170_vm3, %v1836_v39 }
 0xb26   :  { %3411 = vmatmul.mubr.msk.f32.gmra.mrb[30].mxu0 %vm170_vm3, %v1837_v49 }
 0xb27   :  { %3413 = vmatprep.mubr.msk.f32.mxu0 %vm170_vm3, %v1838_v50 }
 0xb2a   :  { %3414 = vmatmul.mubr.msk.f32.gmra.mrb[32].mxu0 %vm170_vm3, %v1839_v55 }
 0xb2b   :  { %3416 = vmatprep.mubr.msk.f32.mxu0 %vm170_vm3, %v1840_v56 }
 0xb2e   :  { %3417 = vmatmul.mubr.msk.f32.gmra.mrb[34].mxu0 %vm170_vm3, %v1841_v62 }
 0xb2f   :  { %3419 = vmatprep.mubr.msk.f32.mxu0 %vm170_vm3, %v1842_v2 }
 0xb32   :  { %3420 = vmatmul.mubr.msk.f32.gmra.mrb[36].mxu0 %vm170_vm3, %v1843_v20 }
 0xbe9   :  { %v3400_v44 = vpop.f32.mrb[22].mxu0 }
 0xbea   :  { %v2039_v31 = vmul.f32 1.442695, %v3400_v44  ;;  %v1958_v3 = vpop.f32.mrb[23].mxu0 }
 0xbeb   :  { %v2037_v33 = vmul.f32 1.442695, %v1958_v3 }
 0xbec   :  { %3697 = vpow2.f32 %v2039_v31 }
 0xbed   :  { %3699 = vpow2.f32 %v2037_v33  ;;  %v3403_v4 = vpop.f32.mrb[24].mxu0 }
 0xbee   :  { %v2043_v5 = vmul.f32 1.442695, %v3403_v4  ;;  %v1968_v9 = vpop.f32.mrb[25].mxu0 }
 0xbef   :  { %v2041_v10 = vmul.f32 1.442695, %v1968_v9 }
 0xbf0   :  { %3701 = vpow2.f32 %v2043_v5 }
 0xbf1   :  { %3703 = vpow2.f32 %v2041_v10  ;;  %v3406_v63 = vpop.f32.mrb[26].mxu0 }
 0xbf2   :  { %v2047_v12 = vmul.f32 1.442695, %v3406_v63  ;;  %v1978_v48 = vpop.f32.mrb[27].mxu0 }
 0xbf3   :  { %v2045_v8 = vmul.f32 1.442695, %v1978_v48 }
 0xbf4   :  { %3705 = vpow2.f32 %v2047_v12 }
 0xbf5   :  { %3707 = vpow2.f32 %v2045_v8  ;;  %v3409_v13 = vpop.f32.mrb[28].mxu0 }
 0xbf6   :  { %v4144_v1 = vpop.eup %3697  ;;  %v2051_v14 = vmul.f32 1.442695, %v3409_v13  ;;  %v1988_v6 = vpop.f32.mrb[29].mxu0 }
 0xbf7   :  { %v4146_v16 = vpop.eup %3699  ;;  %v2076_v0 = vsel %vm679_vm5, %v4144_v1, 0.0  ;;  %v2049_v17 = vmul.f32 1.442695, %v1988_v6 }
 0xbf8   :  { %v2077_v34 = vrot.slane %v2076_v0, 4  ;;  %v2069_v61 = vsel %vm679_vm5, %v4146_v16, 0.0  ;;  %3709 = vpow2.f32 %v2051_v14 }
 0xbf9   :  { %v2070_v25 = vrot.slane %v2069_v61, 4  ;;  %3711 = vpow2.f32 %v2049_v17  ;;  %v3412_v18 = vpop.f32.mrb[30].mxu0 }
 0xbfa   :  { %v4152_v19 = vpop.eup %3701  ;;  %v2078_v11 = vadd.f32 %v2077_v34, %v2076_v0  ;;  %v2055_v22 = vmul.f32 1.442695, %v3412_v18  ;;  %v1998_v15 = vpop.f32.mrb[31].mxu0 }
 0xbfb   :  { %v4154_v24 = vpop.eup %3703  ;;  %v2071_v23 = vadd.f32 %v2070_v25, %v2069_v61  ;;  %v2090_v29 = vsel %vm679_vm5, %v4152_v19, 0.0  ;;  %v2053_v46 = vmul.f32 1.442695, %v1998_v15 }
 0xbfc   :  { %v2079_v30 = vrot.slane %v2078_v11, 2  ;;  %v2091_v32 = vrot.slane %v2090_v29, 4  ;;  %v2083_v35 = vsel %vm679_vm5, %v4154_v24, 0.0  ;;  %3713 = vpow2.f32 %v2055_v22 }
 0xbfd   :  { %v2072_v36 = vrot.slane %v2071_v23, 2  ;;  %v2084_v37 = vrot.slane %v2083_v35, 4  ;;  %3715 = vpow2.f32 %v2053_v46  ;;  %v3415_v26 = vpop.f32.mrb[32].mxu0 }
 0xbfe   :  { %v4160_v27 = vpop.eup %3705  ;;  %v2080_v7 = vadd.f32 %v2079_v30, %v2078_v11  ;;  %v2092_v38 = vadd.f32 %v2091_v32, %v2090_v29  ;;  %v2059_v28 = vmul.f32 1.442695, %v3415_v26  ;;  %v2008_v39 = vpop.f32.mrb[33].mxu0 }
 0xbff   :  { %v4162_v40 = vpop.eup %3707  ;;  %v2073_v41 = vadd.f32 %v2072_v36, %v2071_v23  ;;  %v2085_v42 = vadd.f32 %v2084_v37, %v2083_v35  ;;  %v2104_v45 = vsel %vm679_vm5, %v4160_v27, 0.0  ;;  %v2057_v47 = vmul.f32 1.442695, %v2008_v39 }
 0xc00   :  { %v2081_v49 = vrot.slane %v2080_v7, 1  ;;  %v2093_v50 = vrot.slane %v2092_v38, 2  ;;  %v2105_v52 = vrot.slane %v2104_v45, 4  ;;  %v2097_v53 = vsel %vm679_vm5, %v4162_v40, 0.0 }
 0xc01   :  { %v2074_v54 = vrot.slane %v2073_v41, 1  ;;  %v2086_v21 = vrot.slane %v2085_v42, 2  ;;  %v2098_v55 = vrot.slane %v2097_v53, 4  ;;  %3717 = vpow2.f32 %v2059_v28  ;;  %v3418_v56 = vpop.f32.mrb[34].mxu0 }
 0xc02   :  { %v4168_v57 = vpop.eup %3709  ;;  %v2082_v58 = vadd.f32 %v2081_v49, %v2080_v7  ;;  %v2094_v60 = vadd.f32 %v2093_v50, %v2092_v38  ;;  %v2106_v62 = vadd.f32 %v2105_v52, %v2104_v45  ;;  %3719 = vpow2.f32 %v2057_v47  ;;  %v2018_v2 = vpop.f32.mrb[35].mxu0 }
 0xc03   :  { %v4170_v43 = vpop.eup %3711  ;;  %v2075_v20 = vadd.f32 %v2074_v54, %v2073_v41  ;;  %v2087_v44 = vadd.f32 %v2086_v21, %v2085_v42  ;;  %v2099_v31 = vadd.f32 %v2098_v55, %v2097_v53  ;;  %v2118_v3 = vsel %vm679_vm5, %v4168_v57, 0.0 }
 0xc04   :  { %3721 = vrcp.f32 %v2082_v58  ;;  %v2095_v33 = vrot.slane %v2094_v60, 1  ;;  %v2107_v4 = vrot.slane %v2106_v62, 2  ;;  %v2119_v5 = vrot.slane %v2118_v3, 4 }
 0xc05   :  { %3723 = vrcp.f32 %v2075_v20  ;;  %v2088_v9 = vrot.slane %v2087_v44, 1  ;;  %v2100_v10 = vrot.slane %v2099_v31, 2  ;;  %v2111_v63 = vsel %vm679_vm5, %v4170_v43, 0.0  ;;  %v3421_v12 = vpop.f32.mrb[36].mxu0 }
 0xc06   :  { %v4176_v48 = vpop.eup %3713  ;;  %v2096_v8 = vadd.f32 %v2095_v33, %v2094_v60  ;;  %v2108_v13 = vadd.f32 %v2107_v4, %v2106_v62  ;;  %v2120_v14 = vadd.f32 %v2119_v5, %v2118_v3  ;;  %v2112_v6 = vrot.slane %v2111_v63, 4  ;;  %v2028_v0 = vpop.f32.mrb[37].mxu0 }
 0xc07   :  { %v4178_v17 = vpop.eup %3715  ;;  %v2089_v34 = vadd.f32 %v2088_v9, %v2087_v44  ;;  %v2101_v61 = vadd.f32 %v2100_v10, %v2099_v31  ;;  %v2132_v25 = vsel %vm679_vm5, %v4176_v48, 0.0  ;;  %v2063_v18 = vmul.f32 1.442695, %v3418_v56 }
 0xc08   :  { %3725 = vrcp.f32 %v2096_v8  ;;  %v2109_v11 = vrot.slane %v2108_v13, 1  ;;  %v2121_v22 = vrot.slane %v2120_v14, 2  ;;  %v2113_v15 = vadd.f32 %v2112_v6, %v2111_v63 }
 0xc09   :  { %3727 = vrcp.f32 %v2089_v34  ;;  %v2102_v23 = vrot.slane %v2101_v61, 1  ;;  %v2133_v29 = vrot.slane %v2132_v25, 4  ;;  %v2125_v46 = vsel %vm679_vm5, %v4178_v17, 0.0 }
 0xc0a   :  { %v2110_v30 = vadd.f32 %v2109_v11, %v2108_v13  ;;  %v2122_v32 = vadd.f32 %v2121_v22, %v2120_v14  ;;  %v2114_v35 = vrot.slane %v2113_v15, 2  ;;  %v2126_v36 = vrot.slane %v2125_v46, 4 }
 0xc0b   :  { %v4184_v37 = vpop.eup %3717  ;;  %v2103_v26 = vadd.f32 %v2102_v23, %v2101_v61  ;;  %v2134_v7 = vadd.f32 %v2133_v29, %v2132_v25  ;;  %3729 = vpow2.f32 %v2063_v18  ;;  %v2061_v38 = vmul.f32 1.442695, %v2018_v2 }
 0xc0c   :  { %v4186_v28 = vpop.eup %3719  ;;  %3731 = vrcp.f32 %v2110_v30  ;;  %v2123_v39 = vrot.slane %v2122_v32, 1  ;;  %v2115_v41 = vadd.f32 %v2114_v35, %v2113_v15  ;;  %v2127_v42 = vadd.f32 %v2126_v36, %v2125_v46 }
 0xc0d   :  { %3733 = vrcp.f32 %v2103_v26  ;;  %v2135_v45 = vrot.slane %v2134_v7, 2  ;;  %v2146_v47 = vsel %vm679_vm5, %v4184_v37, 0.0  ;;  %v2139_v49 = vsel %vm679_vm5, %v4186_v28, 0.0 }
 0xc0e   :  { %v3722_v50 = vpop.eup %3721  ;;  %v2124_v52 = vadd.f32 %v2123_v39, %v2122_v32  ;;  %v2116_v53 = vrot.slane %v2115_v41, 1  ;;  %v2128_v54 = vrot.slane %v2127_v42, 2  ;;  %v2147_v21 = vrot.slane %v2146_v47, 4 }
 0xc0f   :  { %v3724_v55 = vpop.eup %3723  ;;  %v2136_v56 = vadd.f32 %v2135_v45, %v2134_v7  ;;  %v2140_v58 = vrot.slane %v2139_v49, 4  ;;  %3735 = vpow2.f32 %v2061_v38  ;;  %v2067_v60 = vmul.f32 1.442695, %v3421_v12 }
 0xc10   :  { %3737 = vrcp.f32 %v2124_v52  ;;  %v2117_v62 = vadd.f32 %v2116_v53, %v2115_v41  ;;  %v2129_v2 = vadd.f32 %v2128_v54, %v2127_v42  ;;  %v2148_v20 = vadd.f32 %v2147_v21, %v2146_v47 }
 0xc11   :  { %v2137_v44 = vrot.slane %v2136_v56, 1  ;;  %v2141_v31 = vadd.f32 %v2140_v58, %v2139_v49  ;;  %3739 = vpow2.f32 %v2067_v60  ;;  %v2065_v3 = vmul.f32 1.442695, %v2028_v0 }
 0xc12   :  { %v3726_v33 = vpop.eup %3725  ;;  %3741 = vrcp.f32 %v2117_v62  ;;  %v2130_v4 = vrot.slane %v2129_v2, 1  ;;  %v2149_v5 = vrot.slane %v2148_v20, 2  ;;  %v2197_v9 = vmul.f32 %v3724_v55, %v4146_v16 }
 0xc13   :  { %v3728_v10 = vpop.eup %3727  ;;  %v2138_v63 = vadd.f32 %v2137_v44, %v2136_v56  ;;  %v2142_v8 = vrot.slane %v2141_v31, 2  ;;  %3743 = vpow2.f32 %v2065_v3  ;;  %v2198_v12 = vmul.f32 %v3722_v50, %v4144_v1 }
 0xc14   :  { %v2131_v13 = vadd.f32 %v2130_v4, %v2129_v2  ;;  %v2150_v14 = vadd.f32 %v2149_v5, %v2148_v20  ;;  %3424 = vmatprep.mubr.msk.f32.mxu1 %vm679_vm5, %v2197_v9  ;;  %v2199_v6 = vmul.f32 %v3728_v10, %v4154_v24  ;;  %v2200_v22 = vmul.f32 %v3726_v33, %v4152_v19 }
 0xc15   :  { %v4196_v34 = vpop.eup %3729  ;;  %3745 = vrcp.f32 %v2138_v63  ;;  %v2143_v0 = vadd.f32 %v2142_v8, %v2141_v31  ;;  %3425 = vmatmul.mubr.msk.f32.vlgmr.msra.gmra.mrb[22].mxu1 %vm679_vm5, %v2198_v12 }
 0xc16   :  { %v3732_v61 = vpop.eup %3731  ;;  %3747 = vrcp.f32 %v2131_v13  ;;  %v2151_v16 = vrot.slane %v2150_v14, 1  ;;  %v2160_v25 = vsel %vm679_vm5, %v4196_v34, 0.0  ;;  %3427 = vmatprep.mubr.msk.f32.mxu1 %vm679_vm5, %v2199_v6 }
 0xc17   :  { %v3734_v1 = vpop.eup %3733  ;;  %v2144_v18 = vrot.slane %v2143_v0, 1  ;;  %v2161_v11 = vrot.slane %v2160_v25, 4  ;;  %v2202_v19 = vmul.f32 %v3732_v61, %v4160_v27  ;;  %v1534_v61 = vld [vmem:[#allocation2 + $0x148] sm:$0xff] }
 0xc18   :  { %v2152_v24 = vadd.f32 %v2151_v16, %v2150_v14  ;;  %v2201_v15 = vmul.f32 %v3734_v1, %v4162_v40  ;;  %v1536_v1 = vld [vmem:[#allocation2 + $0x158] sm:$0xff] }
 0xc19   :  { %v3736_v23 = vpop.eup %3735  ;;  %v2145_v29 = vadd.f32 %v2144_v18, %v2143_v0  ;;  %v2162_v46 = vadd.f32 %v2161_v11, %v2160_v25  ;;  %3428 = vmatmul.mubr.msk.f32.gmra.mrb[24].mxu1 %vm679_vm5, %v2200_v22  ;;  %v1533_v0 = vld [vmem:[#allocation2 + $0x140] sm:$0xff]  ;;  %v1535_v25 = vld [vmem:[#allocation2 + $0x150] sm:$0xff]  ;;  %v2407_v18 = vpop.permute.xlu1 %2406 }
 0xc1a   :  { %v3738_v30 = vpop.eup %3737  ;;  %3749 = vrcp.f32 %v2152_v24  ;;  %v2153_v32 = vsel %vm679_vm5, %v3736_v23, 0.0  ;;  %3430 = vmatprep.mubr.msk.f32.mxu1 %vm679_vm5, %v2201_v15  ;;  %v3576_v16 = vpack.c.bf16 %v1534_v61, %v1533_v0 }
 0xc1b   :  { %v3740_v35 = vpop.eup %3739  ;;  %3751 = vrcp.f32 %v2145_v29  ;;  %v2163_v36 = vrot.slane %v2162_v46, 2  ;;  %v2154_v26 = vrot.slane %v2153_v32, 4  ;;  %v2204_v49 = vmul.f32 %v3738_v30, %v4168_v57 }
 0xc1c   :  { %v3742_v7 = vpop.eup %3741  ;;  %v2174_v40 = vsel %vm679_vm5, %v3740_v35, 0.0  ;;  %3577 = vmatprep.subr.bf16.mxu0 %v3576_v16 }
 0xc1d   :  { %v3744_v38 = vpop.eup %3743  ;;  %v2164_v39 = vadd.f32 %v2163_v36, %v2162_v46  ;;  %v2155_v41 = vadd.f32 %v2154_v26, %v2153_v32  ;;  %v2175_v42 = vrot.slane %v2174_v40, 4  ;;  %3431 = vmatmul.mubr.msk.f32.gmra.mrb[26].mxu1 %vm679_vm5, %v2202_v19  ;;  %v2203_v45 = vmul.f32 %v3742_v7, %v4170_v43  ;;  %3579 = vmatpush3.bf16.msra.mxu0 %v3576_v16 }
 0xc1e   :  { %v2167_v47 = vsel %vm679_vm5, %v3744_v38, 0.0 }
 0xc1f   :  { %v3746_v50 = vpop.eup %3745  ;;  %v2165_v52 = vrot.slane %v2164_v39, 1  ;;  %v2156_v53 = vrot.slane %v2155_v41, 2  ;;  %v2176_v54 = vadd.f32 %v2175_v42, %v2174_v40  ;;  %v2168_v27 = vrot.slane %v2167_v47, 4  ;;  %3433 = vmatprep.mubr.msk.f32.mxu1 %vm679_vm5, %v2203_v45 }
 0xc20   :  { %v3748_v21 = vpop.eup %3747  ;;  %v2206_v57 = vmul.f32 %v3746_v50, %v4176_v48 }
 0xc21   :  { %v2157_v55 = vadd.f32 %v2156_v53, %v2155_v41  ;;  %v2177_v56 = vrot.slane %v2176_v54, 2  ;;  %v2169_v58 = vadd.f32 %v2168_v27, %v2167_v47  ;;  %3434 = vmatmul.mubr.msk.f32.gmra.mrb[28].mxu1 %vm679_vm5, %v2204_v49  ;;  %v2166_v60 = vadd.f32 %v2165_v52, %v2164_v39 }
 0xc22   :  { %v2205_v43 = vmul.f32 %v3748_v21, %v4178_v17 }
 0xc23   :  { %v2158_v62 = vrot.slane %v2157_v55, 1  ;;  %v2178_v2 = vadd.f32 %v2177_v56, %v2176_v54  ;;  %v2170_v20 = vrot.slane %v2169_v58, 2  ;;  %3753 = vrcp.f32 %v2166_v60 }
 0xc24   :  { %v3750_v44 = vpop.eup %3749  ;;  %3436 = vmatprep.mubr.msk.f32.mxu1 %vm679_vm5, %v2205_v43 }
 0xc25   :  { %v3752_v31 = vpop.eup %3751  ;;  %v2159_v3 = vadd.f32 %v2158_v62, %v2157_v55  ;;  %v2179_v33 = vrot.slane %v2178_v2, 1  ;;  %v2171_v4 = vadd.f32 %v2170_v20, %v2169_v58  ;;  %3437 = vmatmul.mubr.msk.f32.gmra.mrb[30].mxu1 %vm679_vm5, %v2206_v57  ;;  %v2208_v10 = vmul.f32 %v3750_v44, %v4184_v37 }
 0xc26   :  { %v2207_v5 = vmul.f32 %v3752_v31, %v4186_v28 }
 0xc27   :  { %3755 = vrcp.f32 %v2159_v3  ;;  %v2180_v9 = vadd.f32 %v2179_v33, %v2178_v2  ;;  %v2172_v17 = vrot.slane %v2171_v4, 1 }
 0xc28   :  { %3439 = vmatprep.mubr.msk.f32.mxu1 %vm679_vm5, %v2207_v5 }
 0xc29   :  { %v2173_v48 = vadd.f32 %v2172_v17, %v2171_v4  ;;  %3440 = vmatmul.mubr.msk.f32.gmra.mrb[32].mxu1 %vm679_vm5, %v2208_v10  ;;  %3757 = vrcp.f32 %v2180_v9 }
 0xc2b   :  { %3759 = vrcp.f32 %v2173_v48 }
 0xc2d   :  { %v3754_v63 = vpop.eup %3753 }
 0xc2e   :  { %v2210_v13 = vmul.f32 %v3754_v63, %v4196_v34  ;;  %v3580_v34 = vpack.c.bf16 %v1536_v1, %v1535_v25 }
 0xc30   :  { %3581 = vmatprep.subr.bf16.mxu0 %v3580_v34 }
 0xc31   :  { %v3756_v8 = vpop.eup %3755  ;;  %3583 = vmatpush3.bf16.msra.mxu0 %v3580_v34 }
 0xc32   :  { %v2209_v12 = vmul.f32 %v3756_v8, %v3736_v23 }
 0xc33   :  { %v3758_v14 = vpop.eup %3757 }
 0xc34   :  { %3442 = vmatprep.mubr.msk.f32.mxu1 %vm679_vm5, %v2209_v12  ;;  %v2212_v37 = vmul.f32 %v3758_v14, %v3740_v35 }
 0xc35   :  { %v3760_v28 = vpop.eup %3759  ;;  %3443 = vmatmul.mubr.msk.f32.gmra.mrb[34].mxu1 %vm679_vm5, %v2210_v13 }
 0xc36   :  { %v2211_v6 = vmul.f32 %v3760_v28, %v3744_v38  ;;  %v4236_v28 = vpop.permute.xlu1 %2408 }
 0xc38   :  { %3445 = vmatprep.mubr.msk.f32.mxu1 %vm679_vm5, %v2211_v6 }
 0xc39   :  { %3446 = vmatmul.mubr.msk.f32.gmra.mrb[36].mxu1 %vm679_vm5, %v2212_v37 }
 0xce8   :  { %v3426_v11 = vpop.f32.mrb[22].mxu1 }
 0xce9   :  { %v2413_v22 = vmul.f32 %v3426_v11, %v2407_v18  ;;  %v2327_v24 = vpop.f32.mrb[23].mxu1 }
 0xcea   :  { %v2412_v15 = vmul.f32 %v2407_v18, %v2327_v24 }
 0xceb   :  { %v2435_v23 = vsel %vm170_vm3, %v2413_v22, 0.0 }
 0xcec   :  { %v2436_v29 = vrot.slane %v2435_v23, 4  ;;  %v2428_v46 = vsel %vm170_vm3, %v2412_v15, 0.0  ;;  %v3429_v30 = vpop.f32.mrb[24].mxu1 }
 0xced   :  { %v2429_v32 = vrot.slane %v2428_v46, 4  ;;  %v2415_v35 = vmul.f32 %v3429_v30, %v2407_v18  ;;  %v2337_v36 = vpop.f32.mrb[25].mxu1 }
 0xcee   :  { %v2437_v26 = vadd.f32 %v2436_v29, %v2435_v23  ;;  %v2414_v19 = vmul.f32 %v2407_v18, %v2337_v36 }
 0xcef   :  { %v2430_v7 = vadd.f32 %v2429_v32, %v2428_v46  ;;  %v2449_v40 = vsel %vm170_vm3, %v2415_v35, 0.0 }
 0xcf0   :  { %v2438_v38 = vrot.slane %v2437_v26, 2  ;;  %v2450_v39 = vrot.slane %v2449_v40, 4  ;;  %v2442_v41 = vsel %vm170_vm3, %v2414_v19, 0.0  ;;  %v3432_v42 = vpop.f32.mrb[26].mxu1 }
 0xcf1   :  { %v2431_v45 = vrot.slane %v2430_v7, 2  ;;  %v2443_v47 = vrot.slane %v2442_v41, 4  ;;  %v2417_v49 = vmul.f32 %v3432_v42, %v2407_v18  ;;  %v2347_v50 = vpop.f32.mrb[27].mxu1 }
 0xcf2   :  { %v2439_v52 = vadd.f32 %v2438_v38, %v2437_v26  ;;  %v2451_v53 = vadd.f32 %v2450_v39, %v2449_v40  ;;  %v2416_v54 = vmul.f32 %v2407_v18, %v2347_v50 }
 0xcf3   :  { %v2432_v27 = vadd.f32 %v2431_v45, %v2430_v7  ;;  %v2444_v21 = vadd.f32 %v2443_v47, %v2442_v41  ;;  %v2463_v55 = vsel %vm170_vm3, %v2417_v49, 0.0 }
 0xcf4   :  { %v2440_v56 = vrot.slane %v2439_v52, 1  ;;  %v2452_v58 = vrot.slane %v2451_v53, 2  ;;  %v2464_v60 = vrot.slane %v2463_v55, 4  ;;  %v2456_v43 = vsel %vm170_vm3, %v2416_v54, 0.0  ;;  %v3435_v62 = vpop.f32.mrb[28].mxu1 }
 0xcf5   :  { %v2433_v2 = vrot.slane %v2432_v27, 1  ;;  %v2445_v20 = vrot.slane %v2444_v21, 2  ;;  %v2457_v57 = vrot.slane %v2456_v43, 4  ;;  %v2419_v44 = vmul.f32 %v3435_v62, %v2407_v18  ;;  %v2357_v31 = vpop.f32.mrb[29].mxu1 }
 0xcf6   :  { %v2441_v3 = vadd.f32 %v2440_v56, %v2439_v52  ;;  %v2453_v33 = vadd.f32 %v2452_v58, %v2451_v53  ;;  %v2465_v4 = vadd.f32 %v2464_v60, %v2463_v55  ;;  %v2418_v5 = vmul.f32 %v2407_v18, %v2357_v31 }
 0xcf7   :  { %v2434_v9 = vadd.f32 %v2433_v2, %v2432_v27  ;;  %v2446_v17 = vadd.f32 %v2445_v20, %v2444_v21  ;;  %v2458_v10 = vadd.f32 %v2457_v57, %v2456_v43  ;;  %v2477_v48 = vsel %vm170_vm3, %v2419_v44, 0.0 }
 0xcf8   :  { %v2454_v63 = vrot.slane %v2453_v33, 1  ;;  %v2466_v8 = vrot.slane %v2465_v4, 2  ;;  %v2478_v12 = vrot.slane %v2477_v48, 4  ;;  %v2470_v13 = vsel %vm170_vm3, %v2418_v5, 0.0  ;;  %v3438_v14 = vpop.f32.mrb[30].mxu1 }
 0xcf9   :  { %v2560_v6 = vsel %vm1175_vm6, %v2441_v3, %v2434_v9  ;;  %v2447_v37 = vrot.slane %v2446_v17, 1  ;;  %v2459_v0 = vrot.slane %v2458_v10, 2  ;;  %v2471_v61 = vrot.slane %v2470_v13, 4  ;;  %v2367_v16 = vpop.f32.mrb[31].mxu1 }
 0xcfa   :  { %v2467_v25 = vadd.f32 %v2466_v8, %v2465_v4  ;;  %v2479_v1 = vadd.f32 %v2478_v12, %v2477_v48  ;;  %v2421_v34 = vmul.f32 %v3438_v14, %v4236_v28  ;;  %v2420_v24 = vmul.f32 %v4236_v28, %v2367_v16 }
 0xcfb   :  { %v2448_v18 = vadd.f32 %v2447_v37, %v2446_v17  ;;  %v2460_v11 = vadd.f32 %v2459_v0, %v2458_v10  ;;  %v2472_v22 = vadd.f32 %v2471_v61, %v2470_v13  ;;  %v2455_v15 = vadd.f32 %v2454_v63, %v2453_v33 }
 0xcfc   :  { %v2480_v23 = vrot.slane %v2479_v1, 2  ;;  %v2491_v29 = vsel %vm170_vm3, %v2421_v34, 0.0  ;;  %v3441_v46 = vpop.f32.mrb[32].mxu1  ;;  %v2468_v19 = vrot.slane %v2467_v25, 1  ;;  %v2484_v40 = vsel %vm170_vm3, %v2420_v24, 0.0 }
 0xcfd   :  { %v2561_v30 = vsel %vm1177_vm7, %v2448_v18, %v2560_v6  ;;  %v2461_v32 = vrot.slane %v2460_v11, 1  ;;  %v2473_v35 = vrot.slane %v2472_v22, 2  ;;  %v2492_v36 = vrot.slane %v2491_v29, 4  ;;  %v2377_v26 = vpop.f32.mrb[33].mxu1 }
 0xcfe   :  { %v2481_v7 = vadd.f32 %v2480_v23, %v2479_v1  ;;  %v2423_v38 = vmul.f32 %v3441_v46, %v4236_v28  ;;  %v2485_v45 = vrot.slane %v2484_v40, 4  ;;  %v2422_v50 = vmul.f32 %v4236_v28, %v2377_v26 }
 0xcff   :  { %v2462_v39 = vadd.f32 %v2461_v32, %v2460_v11  ;;  %v2474_v41 = vadd.f32 %v2473_v35, %v2472_v22  ;;  %v2493_v42 = vadd.f32 %v2492_v36, %v2491_v29  ;;  %v2562_v52 = vsel %vm1179_vm8, %v2455_v15, %v2561_v30 }
 0xd00   :  { %v2482_v47 = vrot.slane %v2481_v7, 1  ;;  %v2505_v49 = vsel %vm170_vm3, %v2423_v38, 0.0  ;;  %v2486_v27 = vadd.f32 %v2485_v45, %v2484_v40  ;;  %v2469_v55 = vadd.f32 %v2468_v19, %v2467_v25 }
 0xd01   :  { %v2475_v53 = vrot.slane %v2474_v41, 1  ;;  %v2494_v54 = vrot.slane %v2493_v42, 2  ;;  %v2506_v21 = vrot.slane %v2505_v49, 4  ;;  %v2498_v56 = vsel %vm170_vm3, %v2422_v50, 0.0 }
 0xd02   :  { %v2563_v58 = vsel %vm1181_vm9, %v2462_v39, %v2562_v52  ;;  %v2487_v62 = vrot.slane %v2486_v27, 2  ;;  %v2483_v20 = vadd.f32 %v2482_v47, %v2481_v7  ;;  %v2499_v57 = vrot.slane %v2498_v56, 4 }
 0xd03   :  { %v2476_v60 = vadd.f32 %v2475_v53, %v2474_v41  ;;  %v2495_v43 = vadd.f32 %v2494_v54, %v2493_v42  ;;  %v2507_v2 = vadd.f32 %v2506_v21, %v2505_v49  ;;  %v2564_v44 = vsel %vm1183_vm10, %v2469_v55, %v2563_v58 }
 0xd04   :  { %v2488_v3 = vadd.f32 %v2487_v62, %v2486_v27  ;;  %v2500_v5 = vadd.f32 %v2499_v57, %v2498_v56 }
 0xd05   :  { %v2496_v31 = vrot.slane %v2495_v43, 1  ;;  %v2508_v33 = vrot.slane %v2507_v2, 2  ;;  %v2565_v4 = vsel %vm1185_vm11, %v2476_v60, %v2564_v44 }
 0xd06   :  { %v2566_v9 = vsel %vm1187_vm12, %v2483_v20, %v2565_v4  ;;  %v2489_v10 = vrot.slane %v2488_v3, 1  ;;  %v2501_v63 = vrot.slane %v2500_v5, 2  ;;  %v3091_v20 = vld [vmem:[%s4318_s2 + $0x11] ss:$0 sm:$0xff] }
 0xd07   :  { %v2497_v17 = vadd.f32 %v2496_v31, %v2495_v43  ;;  %v2509_v48 = vadd.f32 %v2508_v33, %v2507_v2  ;;  %3456 = vmatprep.mubr.msk.f32.mxu0 %vm170_vm3, %v2566_v9 }
 0xd08   :  { %v3444_v8 = vpop.f32.mrb[34].mxu1  ;;  %v2490_v12 = vadd.f32 %v2489_v10, %v2488_v3  ;;  %v2502_v6 = vadd.f32 %v2501_v63, %v2500_v5  ;;  %v1538_v10 = vld [vmem:[#allocation2 + $0x168] sm:$0xff] }
 0xd09   :  { %v2425_v13 = vmul.f32 %v3444_v8, %v4236_v28  ;;  %v2387_v14 = vpop.f32.mrb[35].mxu1  ;;  %v2510_v61 = vrot.slane %v2509_v48, 1 }
 0xd0a   :  { %v2424_v37 = vmul.f32 %v4236_v28, %v2387_v14  ;;  %v2567_v0 = vsel %vm1175_vm6, %v2497_v17, %v2490_v12  ;;  %v2503_v25 = vrot.slane %v2502_v6, 1  ;;  %v1537_v17 = vld [vmem:[#allocation2 + $0x160] sm:$0xff] }
 0xd0b   :  { %v2519_v16 = vsel %vm170_vm3, %v2425_v13, 0.0  ;;  %v2511_v46 = vadd.f32 %v2510_v61, %v2509_v48  ;;  %v3584_v48 = vpack.c.bf16 %v1538_v10, %v1537_v17  ;;  %v1539_v61 = vld [vmem:[#allocation2 + $0x170] sm:$0xff] }
 0xd0c   :  { %v2520_v1 = vrot.slane %v2519_v16, 4  ;;  %v2512_v34 = vsel %vm170_vm3, %v2424_v37, 0.0  ;;  %v3447_v18 = vpop.f32.mrb[36].mxu1  ;;  %v2504_v15 = vadd.f32 %v2503_v25, %v2502_v6 }
 0xd0d   :  { %v2513_v11 = vrot.slane %v2512_v34, 4  ;;  %v2427_v22 = vmul.f32 %v3447_v18, %v4236_v28  ;;  %v2397_v24 = vpop.f32.mrb[37].mxu1  ;;  %3585 = vmatprep.subr.bf16.mxu1 %v3584_v48  ;;  %v1543_v18 = vld [vmem:[#allocation2 + $0x190] sm:$0xff] }
 0xd0e   :  { %v2521_v23 = vadd.f32 %v2520_v1, %v2519_v16  ;;  %v2426_v29 = vmul.f32 %v4236_v28, %v2397_v24  ;;  %v2568_v35 = vsel %vm1177_vm7, %v2504_v15, %v2567_v0  ;;  %3587 = vmatpush3.bf16.msra.mxu1 %v3584_v48  ;;  %v1540_v16 = vld [vmem:[#allocation2 + $0x178] sm:$0xff]  ;;  %v1541_v1 = vld [vmem:[#allocation2 + $0x180] sm:$0xff] }
 0xd0f   :  { %v2514_v30 = vadd.f32 %v2513_v11, %v2512_v34  ;;  %v2533_v32 = vsel %vm170_vm3, %v2427_v22, 0.0  ;;  %v2569_v40 = vsel %vm1179_vm8, %v2511_v46, %v2568_v35  ;;  %v3588_v25 = vpack.c.bf16 %v1540_v16, %v1539_v61  ;;  %v1542_v34 = vld [vmem:[#allocation2 + $0x188] sm:$0xff]  ;;  %v1544_v22 = vld [vmem:[#allocation2 + $0x198] sm:$0xff]  ;;  %v1545_v15 = vld [vmem:[#allocation2 + $0x1a0] sm:$0xff] }
 0xd10   :  { %v2522_v36 = vrot.slane %v2521_v23, 2  ;;  %v2534_v26 = vrot.slane %v2533_v32, 4  ;;  %v2526_v19 = vsel %vm170_vm3, %v2426_v29, 0.0  ;;  %v3592_v11 = vpack.c.bf16 %v1542_v34, %v1541_v1 }
 0xd11   :  { %v2515_v7 = vrot.slane %v2514_v30, 2  ;;  %v2527_v38 = vrot.slane %v2526_v19, 4  ;;  %3589 = vmatprep.subr.bf16.mxu1 %v3588_v25  ;;  %v3596_v24 = vpack.c.bf16 %v1544_v22, %v1543_v18 }
 0xd12   :  { %v2523_v39 = vadd.f32 %v2522_v36, %v2521_v23  ;;  %v2535_v41 = vadd.f32 %v2534_v26, %v2533_v32  ;;  %3591 = vmatpush3.bf16.msra.mxu1 %v3588_v25  ;;  %v1546_v23 = vld [vmem:[#allocation2 + $0x1a8] sm:$0xff]  ;;  %3593 = vmatprep.subr.bf16.mxu0 %v3592_v11 }
 0xd13   :  { %v2516_v42 = vadd.f32 %v2515_v7, %v2514_v30  ;;  %v2528_v45 = vadd.f32 %v2527_v38, %v2526_v19  ;;  %v3600_v29 = vpack.c.bf16 %v1546_v23, %v1545_v15  ;;  %v3094_v7 = vld [vmem:[%s4318_s2 + $0x12] ss:$0 sm:$0xff]  ;;  %v3095_v38 = vld [vmem:[%s4318_s2 + $0x13] ss:$0 sm:$0xff]  ;;  %v3103_v23 = vld [vmem:[%s4318_s2 + $0x17] ss:$0 sm:$0xff] }
 0xd14   :  { %v2524_v47 = vrot.slane %v2523_v39, 1  ;;  %v2536_v28 = vrot.slane %v2535_v41, 2 }
 0xd15   :  { %v2517_v49 = vrot.slane %v2516_v42, 1  ;;  %v2529_v50 = vrot.slane %v2528_v45, 2 }
 0xd16   :  { %v2537_v52 = vadd.f32 %v2536_v28, %v2535_v41  ;;  %v2525_v27 = vadd.f32 %v2524_v47, %v2523_v39 }
 0xd17   :  { %v2518_v53 = vadd.f32 %v2517_v49, %v2516_v42  ;;  %v2530_v54 = vadd.f32 %v2529_v50, %v2528_v45  ;;  %v1547_v49 = vld [vmem:[#allocation2 + $0x1b0] sm:$0xff]  ;;  %v1548_v50 = vld [vmem:[#allocation2 + $0x1b8] sm:$0xff] }
 0xd18   :  { %v2538_v21 = vrot.slane %v2537_v52, 1 }
 0xd19   :  { %v2570_v55 = vsel %vm1181_vm9, %v2518_v53, %v2569_v40  ;;  %v2531_v56 = vrot.slane %v2530_v54, 1  ;;  %v3096_v53 = vld [vmem:[%s4318_s2 + $0x14] ss:$0 sm:$0xff] }
 0xd1a   :  { %v2571_v58 = vsel %vm1183_vm10, %v2525_v27, %v2570_v55  ;;  %v2539_v43 = vadd.f32 %v2538_v21, %v2537_v52  ;;  %v3604_v52 = vpack.c.bf16 %v1548_v50, %v1547_v49 }
 0xd1b   :  { %v2532_v60 = vadd.f32 %v2531_v56, %v2530_v54 }
 0xd1d   :  { %v2572_v62 = vsel %vm1185_vm11, %v2532_v60, %v2571_v58  ;;  %v3099_v60 = vld [vmem:[%s4318_s2 + $0x15] ss:$0 sm:$0xff] }
 0xd1e   :  { %v2573_v2 = vsel %vm1187_vm12, %v2539_v43, %v2572_v62 }
 0xd1f   :  { %3457 = vmatmul.mubr.msk.f32.vlgmr.msra.gmra.mrb[38].mxu0 %vm170_vm3, %v2573_v2 }
 0xd20   :  { %3595 = vmatpush3.bf16.msra.mxu0 %v3592_v11  ;;  %v3102_v11 = vld [vmem:[%s4318_s2 + $0x16] ss:$0 sm:$0xff] }
 0xd21   :  { %3597 = vmatprep.subr.bf16.mxu0 %v3596_v24 }
 0xd24   :  { %3599 = vmatpush3.bf16.msra.mxu0 %v3596_v24 }
 0xd25   :  { %3601 = vmatprep.subr.bf16.mxu0 %v3600_v29 }
 0xd28   :  { %3603 = vmatpush3.bf16.msra.mxu0 %v3600_v29 }
 0xd29   :  { %3605 = vmatprep.subr.bf16.mxu0 %v3604_v52 }
 0xd2c   :  { %3607 = vmatpush3.bf16.msra.mxu0 %v3604_v52 }
 0xdf2   :  { %v3458_v57 = vpop.f32.mrb[38].mxu0 }
 0xdf3   :  { %v2650_v44 = vadd.f32 %v3458_v57, %v3091_v20  ;;  %v2644_v31 = vpop.f32.mrb[39].mxu0 }
 0xdf4   :  { %v2645_v3 = vadd.f32 %v3091_v20, %v2644_v31 }
 0xdf5   :  { %v2654_v33 = vadd.f32 %v2650_v44, %v4084_v51 }
 0xdf6   :  { %v2653_v4 = vadd.f32 %v2645_v3, %v4082_v59 }
 0xdf7   :  { %v2658_v5 = vsel %vm170_vm3, %v2654_v33, 0.0 }
 0xdf8   :  { %2659 = vadd.xlane.f32.xlu1 %v2658_v5  ;;  %v2655_v9 = vsel %vm170_vm3, %v2653_v4, 0.0 }
 0xdf9   :  { %2656 = vadd.xlane.f32.xlu0 %v2655_v9 }
 0xe85   :  { %v2660_v63 = vpop.xlane.xlu1 %2659 }
 0xe86   :  { %v2662_v8 = vmul.f32 0.03125, %v2660_v63  ;;  %v2657_v12 = vpop.xlane.xlu0 %2656 }
 0xe87   :  { %v2661_v13 = vmul.f32 0.03125, %v2657_v12 }
 0xe88   :  { %v2664_v14 = vsub.f32 %v2654_v33, %v2662_v8 }
 0xe89   :  { %v2663_v6 = vsub.f32 %v2653_v4, %v2661_v13  ;;  %v2905_v13 = vld [vmem:[#allocation2 + $0x38] sm:$0xff] }
 0xe8a   :  { %v2666_v37 = vmul.f32 %v2664_v14, %v2664_v14 }
 0xe8b   :  { %v2665_v51 = vmul.f32 %v2663_v6, %v2663_v6 }
 0xe8c   :  { %v2670_v0 = vsel %vm170_vm3, %v2666_v37, 0.0 }
 0xe8d   :  { %v2667_v59 = vsel %vm170_vm3, %v2665_v51, 0.0  ;;  %v2907_v51 = vld [vmem:[#allocation2 + $0x48] sm:$0xff] }
 0xe8e   :  { %2668 = vadd.xlane.f32.xlu0 %v2667_v59  ;;  %v2908_v59 = vld [vmem:[#allocation2 + $0x50] sm:$0xff] }
 0xe8f   :  { %v3612_v37 = vpack.c.bf16 %v2908_v59, %v2907_v51 }
 0xe92   :  { %2671 = vadd.xlane.f32.xlu0 %v2670_v0 }
 0xf1b   :  { %v2669_v46 = vpop.xlane.xlu0 %2668 }
 0xf1c   :  { %v2673_v30 = vmul.f32 0.03125, %v2669_v46 }
 0xf1e   :  { %v2675_v32 = vadd.f32 1e-05, %v2673_v30 }
 0xf1f   :  { %v2672_v35 = vpop.xlane.xlu0 %2671 }
 0xf20   :  { %3761 = vrsqrt.f32 %v2675_v32  ;;  %v2674_v36 = vmul.f32 0.03125, %v2672_v35  ;;  %v3104_v35 = vld [vmem:[%s4318_s2] ss:$0 sm:$0xff] }
 0xf22   :  { %v2676_v26 = vadd.f32 1e-05, %v2674_v36 }
 0xf24   :  { %3763 = vrsqrt.f32 %v2676_v26 }
 0xf2a   :  { %v3762_v19 = vpop.eup %3761 }
 0xf2b   :  { %v2679_v40 = vmul.f32 %v3762_v19, %v2663_v6 }
 0xf2d   :  { %v2685_v39 = vmul.f32 %v3094_v7, %v2679_v40 }
 0xf2e   :  { %v3764_v41 = vpop.eup %3763 }
 0xf2f   :  { %v2680_v42 = vmul.f32 %v3764_v41, %v2664_v14  ;;  %v2691_v45 = vadd.f32 %v3095_v38, %v2685_v39  ;;  %v2906_v14 = vld [vmem:[#allocation2 + $0x40] sm:$0xff] }
 0xf30   :  { %v3608_v6 = vpack.c.bf16 %v2906_v14, %v2905_v13 }
 0xf31   :  { %v2686_v47 = vmul.f32 %v3094_v7, %v2680_v42  ;;  %3467 = vmatprep.mubr.msk.f32.mxu1 %vm170_vm3, %v2691_v45 }
 0xf32   :  { %3609 = vmatprep.subr.bf16.mxu1 %v3608_v6 }
 0xf33   :  { %v2692_v28 = vadd.f32 %v3095_v38, %v2686_v47 }
 0xf35   :  { %3468 = vmatmul.mubr.msk.f32.vlgmr.msra.gmra.mrb[38].mxu1 %vm170_vm3, %v2692_v28 }
 0xf36   :  { %3611 = vmatpush3.bf16.msra.mxu1 %v3608_v6 }
 0xf37   :  { %3613 = vmatprep.subr.bf16.mxu1 %v3612_v37 }
 0xf3a   :  { %3615 = vmatpush3.bf16.msra.mxu1 %v3612_v37 }
0x1008   :  { %v3469_v54 = vpop.f32.mrb[38].mxu1 }
0x1009   :  { %v2775_v27 = vadd.f32 %v3469_v54, %v3096_v53  ;;  %v2769_v21 = vpop.f32.mrb[39].mxu1 }
0x100a   :  { %v2770_v55 = vadd.f32 %v3096_v53, %v2769_v21 }
0x100b   :  { %v2779_v58 = vmax.f32 %v2775_v27, 0.0 }
0x100c   :  { %v2778_v56 = vmax.f32 %v2770_v55, 0.0 }
0x100e   :  { %3486 = vmatprep.mubr.msk.f32.mxu0 %vm1407_vm13, %v2778_v56 }
0x100f   :  { %3487 = vmatmul.mubr.msk.f32.vlgmr.msra.gmra.mrb[40].mxu0 %vm1407_vm13, %v2779_v58 }
0x10e2   :  { %v3488_v43 = vpop.f32.mrb[40].mxu0 }
0x10e3   :  { %v2862_v62 = vadd.f32 %v3488_v43, %v3099_v60  ;;  %v2856_v2 = vpop.f32.mrb[41].mxu0 }
0x10e4   :  { %v2857_v20 = vadd.f32 %v3099_v60, %v2856_v2 }
0x10e5   :  { %v2866_v57 = vadd.f32 %v2862_v62, %v2692_v28 }
0x10e6   :  { %v2865_v44 = vadd.f32 %v2857_v20, %v2691_v45 }
0x10e7   :  { %v2870_v31 = vsel %vm170_vm3, %v2866_v57, 0.0 }
0x10e8   :  { %2871 = vadd.xlane.f32.xlu0 %v2870_v31  ;;  %v2867_v3 = vsel %vm170_vm3, %v2865_v44, 0.0 }
0x10e9   :  { %2868 = vadd.xlane.f32.xlu1 %v2867_v3 }
0x1175   :  { %v2872_v33 = vpop.xlane.xlu0 %2871 }
0x1176   :  { %v2874_v4 = vmul.f32 0.03125, %v2872_v33  ;;  %v2869_v5 = vpop.xlane.xlu1 %2868 }
0x1177   :  { %v2873_v9 = vmul.f32 0.03125, %v2869_v5 }
0x1178   :  { %v2876_v17 = vsub.f32 %v2866_v57, %v2874_v4 }
0x1179   :  { %v2875_v10 = vsub.f32 %v2865_v44, %v2873_v9 }
0x117a   :  { %v2878_v48 = vmul.f32 %v2876_v17, %v2876_v17 }
0x117b   :  { %v2877_v63 = vmul.f32 %v2875_v10, %v2875_v10 }
0x117c   :  { %v2882_v8 = vsel %vm170_vm3, %v2878_v48, 0.0 }
0x117d   :  { %2883 = vadd.xlane.f32.xlu0 %v2882_v8  ;;  %v2879_v12 = vsel %vm170_vm3, %v2877_v63, 0.0 }
0x117e   :  { %2880 = vadd.xlane.f32.xlu1 %v2879_v12 }
0x120a   :  { %v2884_v0 = vpop.xlane.xlu0 %2883 }
0x120b   :  { %v2886_v61 = vmul.f32 0.03125, %v2884_v0  ;;  %v2881_v16 = vpop.xlane.xlu1 %2880 }
0x120c   :  { %v2885_v25 = vmul.f32 0.03125, %v2881_v16 }
0x120d   :  { %v2888_v1 = vadd.f32 1e-05, %v2886_v61 }
0x120e   :  { %v2887_v34 = vadd.f32 1e-05, %v2885_v25 }
0x120f   :  { %3765 = vrsqrt.f32 %v2888_v1 }
0x1210   :  { %3767 = vrsqrt.f32 %v2887_v34 }
0x1219   :  { %v3766_v18 = vpop.eup %3765 }
0x121a   :  { %v3768_v22 = vpop.eup %3767  ;;  %v2892_v24 = vmul.f32 %v3766_v18, %v2876_v17 }
0x121b   :  { %v2891_v15 = vmul.f32 %v3768_v22, %v2875_v10 }
0x121c   :  { %v2898_v29 = vmul.f32 %v3102_v11, %v2892_v24 }
0x121d   :  { %v2897_v46 = vmul.f32 %v3102_v11, %v2891_v15 }
0x121e   :  { %v2904_v32 = vadd.f32 %v3103_v23, %v2898_v29 }
0x121f   :  { %v2903_v30 = vadd.f32 %v3103_v23, %v2897_v46 }
0x1221   :  { %3497 = vmatprep.mubr.msk.f32.mxu1 %vm170_vm3, %v2903_v30 }
0x1222   :  { %3498 = vmatmul.mubr.msk.f32.vlgmr.msra.gmra.mrb[40].mxu1 %vm170_vm3, %v2904_v32 }
0x12f5   :  { %v3499_v36 = vpop.f32.mrb[40].mxu1 }
0x12f6   :  { %v2992_v26 = vadd.f32 %v3499_v36, %v3104_v35  ;;  %v2986_v19 = vpop.f32.mrb[41].mxu1 }
0x12f7   :  { %v2987_v7 = vadd.f32 %v3104_v35, %v2986_v19 }
0x12f8   :  { %2996 = vst [vmem:[%s4319_s3 + $0x8] sm:$0xff] %v2992_v26 }
0x12f9   :  { %2995 = vst [vmem:[%s4319_s3] sm:$0xff] %v2987_v7 }
0x12fa   :  { %3001 = vsyncpa [#allocation3], 1 }

</bundles_post_ra>
